<compile_context>
chip_gen: v6e
topology: v6e:2x2x1
jax: 0.10.0
libtpu: 0.0.40
codegen_flags: <defaults>
</compile_context>

<pallas_src>
import functools

import jax
import jax.numpy as jnp
from jax import lax
from jax.experimental import pallas as pl
from jax.experimental.pallas import tpu as pltpu

BN_EPS = 1e-5
LANES = 128
SUBLANES = 8
FUSE_TAPS_MAX_K = 512          # fuse taps into one matmul while K stays modest


def _round_up(x, m):
    return (x + m - 1) // m * m


def _vmem_limit_bytes():
    """75% of physical VMEM (queried), conservative 48 MiB fallback (v7x-safe)."""
    cap = None
    try:
        cap = getattr(pltpu.get_tpu_info(), "vmem_capacity_bytes", None)
    except Exception:
        cap = None
    if not cap:
        cap = 64 * 1024 * 1024
    return int(cap) * 3 // 4


def _auto_row_tile(Ho, Wo, Cout_p, tile_budget_bytes):
    """Largest output-row tile TR dividing Ho with (TR*Wo) sublane-aligned whose
    (TR*Wo, Cout_p) f32 accumulator fits the per-tile budget."""
    valid = [tr for tr in range(1, Ho + 1)
             if Ho % tr == 0 and (tr == Ho or (tr * Wo) % SUBLANES == 0)]
    fitting = [tr for tr in valid if tr * Wo * Cout_p * 4 <= tile_budget_bytes]
    if fitting:
        return max(fitting)
    # TODO(synk): support a ragged last row tile so prime Ho / huge Wo*Cout_p does
    # not force a whole-image tile when nothing smaller is alignment-compatible.
    return min(valid)


def _conv_stats_kernel(x_ref, w_ref, y_ref, stats_ref, *,
                       kh, kw, stride, dilation, row_tile, Wo,
                       r_per_shard, fuse_taps):
    # x_ref:     (Hp, Wp, Cin_p)                padded NHWC image (bf16), resident
    # w_ref:     (kh*kw*Cin_p, Cout_p) fused or (kh*kw, Cin_p, Cout_p), resident
    # y_ref:     (TM, Cout_p)                   conv output tile (bf16 by default)
    # stats_ref: (2, Cout_p)                    per-(image, shard) running [mean; M2]
    c = pl.program_id(1)
    r = pl.program_id(2)
    TM = row_tile * Wo
    cin_p = x_ref.shape[-1]
    cout_p = y_ref.shape[-1]

    rg = c * r_per_shard + r                         # global row-tile index
    row0 = pl.multiple_of(rg * (row_tile * stride), row_tile * stride)

    def tap(i, j):
        if stride == 1:
            xs = x_ref[pl.ds(row0 + i * dilation, row_tile),
                       pl.ds(j * dilation, Wo), :]
        else:
            xs = x_ref[pl.ds(row0 + i * dilation, row_tile, stride),
                       pl.ds(j * dilation, Wo, stride), :]
        return xs.reshape(TM, cin_p)

    if fuse_taps:
        # One MXU matmul with K = kh*kw*Cin_p (VMEM-side im2col of the resident
        # image); single f32 accumulator write, no per-tap acc traffic.
        lhs = jnp.concatenate([tap(i, j) for i in range(kh) for j in range(kw)],
                              axis=-1)
        acc = jnp.dot(lhs, w_ref[...], preferred_element_type=jnp.float32)
    else:
        acc = jnp.zeros((TM, cout_p), jnp.float32)
        for i in range(kh):
            for j in range(kw):
                acc = acc + jnp.dot(tap(i, j), w_ref[i * kw + j],
                                    preferred_element_type=jnp.float32)

    y_ref[...] = acc.astype(y_ref.dtype)

    # BatchNorm statistics: tile mean + centered sum-of-squares, merged into the
    # per-shard running (mean, M2) with Chan's numerically-stable update.
    inv_tm = 1.0 / float(TM)
    mu_t = jnp.sum(acc, axis=0, keepdims=True) * inv_tm       # (1, Cout_p)
    d = acc - mu_t
    css_t = jnp.sum(d * d, axis=0, keepdims=True)              # (1, Cout_p)

    @pl.when(r == 0)
    def _():
        stats_ref[0:1, :] = mu_t
        stats_ref[1:2, :] = css_t

    @pl.when(r != 0)
    def _():
        cnt_old = (r * TM).astype(jnp.float32)
        cnt_new = cnt_old + float(TM)
        mean_old = stats_ref[0:1, :]
        delta = mu_t - mean_old
        stats_ref[0:1, :] = mean_old + delta * (float(TM) / cnt_new)
        stats_ref[1:2, :] = (stats_ref[1:2, :] + css_t
                             + delta * delta * (cnt_old * float(TM) / cnt_new))


def _bn_relu_kernel(y_ref, scale_ref, shift_ref, o_ref):
    # Folded BN affine (per-channel scale/shift) + ReLU, element-wise math in f32.
    y = y_ref[...].astype(jnp.float32)
    o_ref[...] = jnp.maximum(y * scale_ref[...] + shift_ref[...],
                             0.0).astype(o_ref.dtype)


def conv_bn_act(x, conv_w, gamma, beta, *, stride, padding, dilation=1,
                eps=BN_EPS, compute_dtype=jnp.bfloat16, y_dtype=jnp.bfloat16,
                out_dtype=jnp.float32, row_tile=None,
                x_format="NCHW", out_format="NCHW"):
    """Forward of ConvBnAct (bias=False, act=True) with training-mode BatchNorm."""
    if x_format == "NCHW":
        N, Cin, H, W = x.shape
        x = jnp.transpose(x, (0, 2, 3, 1))           # -> NHWC
    else:                                            # NHWC input (no round trip)
        N, H, W, Cin = x.shape
    Cout, _, kh, kw = conv_w.shape
    Ho = (H + 2 * padding - dilation * (kh - 1) - 1) // stride + 1
    Wo = (W + 2 * padding - dilation * (kw - 1) - 1) // stride + 1
    Hp, Wp = H + 2 * padding, W + 2 * padding
    Cin_p = _round_up(Cin, SUBLANES)
    Cout_p = _round_up(Cout, LANES)
    K_total = kh * kw * Cin_p
    fuse_taps = K_total <= FUSE_TAPS_MAX_K

    # --- VMEM budgeting (generation-aware) --------------------------------------
    vmem_limit = _vmem_limit_bytes()
    itm = jnp.dtype(compute_dtype).itemsize
    x_bytes = Hp * Wp * Cin_p * itm
    w_bytes = kh * kw * Cin_p * Cout_p * itm
    # Inputs are double-buffered by the Pallas pipeline; keep 4 MiB slack for Mosaic
    # internals; roughly 8 tile-sized buffers are live per step (f32 acc + bf16 LHS
    # + double-buffered y in pass 1, in/out double buffers in pass 2).
    resident = 2 * x_bytes + 2 * w_bytes + 4 * 1024 * 1024
    tile_budget = max((vmem_limit - resident) // 8, 128 * 1024)

    if row_tile is None:
        row_tile = _auto_row_tile(Ho, Wo, Cout_p, tile_budget)
    assert Ho % row_tile == 0, (Ho, row_tile)
    R = Ho // row_tile
    TM = row_tile * Wo
    M = N * Ho * Wo

    # Split the row-tile axis across 2 shards ("parallel") when N is small so both
    # v7x TensorCores get work in pass 1; single-TC chips are unaffected.
    n_split = 2 if (N < 4 and R % 2 == 0) else 1
    r_per = R // n_split

    # --- Input / weight prep -----------------------------------------------------
    x = jnp.pad(x, ((0, 0), (padding, padding), (padding, padding), (0, Cin_p - Cin)))
    x = x.astype(compute_dtype)

    # (Cout, Cin, kh, kw) -> (kh*kw, Cin_p, Cout_p); zero-pad Cout to 128 lanes.
    w = jnp.transpose(conv_w, (2, 3, 1, 0)).reshape(kh * kw, Cin, Cout)
    w = jnp.pad(w, ((0, 0), (0, Cin_p - Cin), (0, Cout_p - Cout))).astype(compute_dtype)
    if fuse_taps:
        w = w.reshape(K_total, Cout_p)               # (tap-major, cin-minor) K order
    w_spec = pl.BlockSpec(w.shape, lambda n, c, r: (0,) * w.ndim)

    conv_kernel = functools.partial(
        _conv_stats_kernel, kh=kh, kw=kw, stride=stride, dilation=dilation,
        row_tile=row_tile, Wo=Wo, r_per_shard=r_per, fuse_taps=fuse_taps)

    y_isz = jnp.dtype(y_dtype).itemsize
    o_isz = jnp.dtype(out_dtype).itemsize

    # --- Pass 1: conv tiles + per-(image, shard) BN statistics --------------------
    y, stats = pl.pallas_call(
        conv_kernel,
        out_shape=(jax.ShapeDtypeStruct((N, Ho * Wo, Cout_p), y_dtype),
                   jax.ShapeDtypeStruct((N, n_split, 2, Cout_p), jnp.float32)),
        grid_spec=pltpu.PrefetchScalarGridSpec(
            num_scalar_prefetch=0,
            grid=(N, n_split, r_per),
            in_specs=[
                pl.BlockSpec((None, Hp, Wp, Cin_p), lambda n, c, r: (n, 0, 0, 0)),
                w_spec,
            ],
            out_specs=[
                pl.BlockSpec((None, TM, Cout_p),
                             lambda n, c, r: (n, c * r_per + r, 0)),
                pl.BlockSpec((None, None, 2, Cout_p), lambda n, c, r: (n, c, 0, 0)),
            ],
        ),
        compiler_params=pltpu.CompilerParams(
            dimension_semantics=("parallel", "parallel", "arbitrary"),
            vmem_limit_bytes=vmem_limit),
        cost_estimate=pl.CostEstimate(
            flops=2 * M * K_total * Cout_p,
            transcendentals=0,
            bytes_accessed=int(n_split * N * x_bytes + w_bytes
                               + M * Cout_p * y_isz + N * n_split * 2 * Cout_p * 4)),
    )(x, w)

    # --- Merge partial stats (equal pixel counts) and fold the BN affine ---------
    cnt = float(Ho * Wo) / n_split
    stats = stats.reshape(N * n_split, 2, Cout_p)
    mean_i = stats[:, 0, :]                                       # (P, Cout_p)
    m2_i = stats[:, 1, :]                                         # (P, Cout_p)
    mean = jnp.mean(mean_i, axis=0, keepdims=True)                # (1, Cout_p)
    m2 = (jnp.sum(m2_i, axis=0, keepdims=True)
          + cnt * jnp.sum((mean_i - mean) ** 2, axis=0, keepdims=True))
    var = m2 / float(M)                                           # biased (PyTorch)
    gamma_p = jnp.pad(gamma.astype(jnp.float32), (0, Cout_p - Cout)).reshape(1, Cout_p)
    beta_p = jnp.pad(beta.astype(jnp.float32), (0, Cout_p - Cout)).reshape(1, Cout_p)
    scale = gamma_p * lax.rsqrt(var + eps)
    shift = beta_p - mean * scale

    # --- Pass 2: fused normalize + ReLU over lane-dense tiles ---------------------
    out = pl.pallas_call(
        _bn_relu_kernel,
        out_shape=jax.ShapeDtypeStruct((N, Ho * Wo, Cout_p), out_dtype),
        grid_spec=pltpu.PrefetchScalarGridSpec(
            num_scalar_prefetch=0,
            grid=(N, R),
            in_specs=[
                pl.BlockSpec((None, TM, Cout_p), lambda n, r: (n, r, 0)),
                pl.BlockSpec((1, Cout_p), lambda n, r: (0, 0)),
                pl.BlockSpec((1, Cout_p), lambda n, r: (0, 0)),
            ],
            out_specs=pl.BlockSpec((None, TM, Cout_p), lambda n, r: (n, r, 0)),
        ),
        compiler_params=pltpu.CompilerParams(
            dimension_semantics=("parallel", "parallel"),
            vmem_limit_bytes=vmem_limit),
        cost_estimate=pl.CostEstimate(
            flops=2 * M * Cout_p,
            transcendentals=0,
            bytes_accessed=int(M * Cout_p * (y_isz + o_isz))),
    )(y, scale, shift)

    out = out[:, :, :Cout].reshape(N, Ho, Wo, Cout)               # drop lane padding
    if out_format == "NCHW":
        out = jnp.transpose(out, (0, 3, 1, 2))
    return out


def conv_bn_act_ref(x_nchw, conv_w, gamma, beta, *, stride, padding, dilation=1,
                    eps=BN_EPS, cast_dtype=None):
    """Pure-JAX reference matching PyTorch semantics (training-mode BN)."""
    if cast_dtype is not None:
        x_nchw = x_nchw.astype(cast_dtype).astype(jnp.float32)
        conv_w = conv_w.astype(cast_dtype).astype(jnp.float32)
    y = lax.conv_general_dilated(
        x_nchw, conv_w,
        window_strides=(stride, stride),
        padding=[(padding, padding), (padding, padding)],
        rhs_dilation=(dilation, dilation),
        dimension_numbers=("NCHW", "OIHW", "NCHW"))
    mean = jnp.mean(y, axis=(0, 2, 3), keepdims=True)
    var = jnp.mean((y - mean) ** 2, axis=(0, 2, 3), keepdims=True)
    y_hat = (y - mean) * lax.rsqrt(var + eps)
    out = y_hat * gamma.reshape(1, -1, 1, 1) + beta.reshape(1, -1, 1, 1)
    return jnp.maximum(out, 0.0)


if __name__ == "__main__":
    # ConvBnAct(in_channel=4, out_channel=8, kernel=3, stride=1, padding=1)
    N, Cin, H, W = 2, 4, 16, 16
    Cout, KS, STRIDE, PAD, DIL = 8, 3, 1, 1, 1

    key = jax.random.PRNGKey(0)
    kx, kwt, kg, kb = jax.random.split(key, 4)
    x = jax.random.normal(kx, (N, Cin, H, W), dtype=jnp.float32)
    conv_w = jax.random.normal(kwt, (Cout, Cin, KS, KS), dtype=jnp.float32) * 0.1
    gamma = jax.random.normal(kg, (Cout,), dtype=jnp.float32) * 0.1 + 1.0
    beta = jax.random.normal(kb, (Cout,), dtype=jnp.float32) * 0.1

    # Forced 4-way row tiling: exercises fused-tap matmul, the 2-shard ("megacore")
    # stats split, and the multi-tile Chan accumulation; y stored in bf16.
    fwd_tiled = jax.jit(functools.partial(conv_bn_act, stride=STRIDE, padding=PAD,
                                          dilation=DIL, row_tile=4))
    out = jax.block_until_ready(fwd_tiled(x, conv_w, gamma, beta))

    # VMEM-budget auto-tiling path (single row tile, single shard).
    fwd_auto = jax.jit(functools.partial(conv_bn_act, stride=STRIDE, padding=PAD,
                                         dilation=DIL))
    out_auto = jax.block_until_ready(fwd_auto(x, conv_w, gamma, beta))

    # f32 intermediate path: tight numerical check against the bf16-input reference.
    fwd_f32y = jax.jit(functools.partial(conv_bn_act, stride=STRIDE, padding=PAD,
                                         dilation=DIL, row_tile=4,
                                         y_dtype=jnp.float32))
    out_f32y = jax.block_until_ready(fwd_f32y(x, conv_w, gamma, beta))

    ref_f32 = conv_bn_act_ref(x, conv_w, gamma, beta,
                              stride=STRIDE, padding=PAD, dilation=DIL)
    ref_bf16 = conv_bn_act_ref(x, conv_w, gamma, beta, stride=STRIDE, padding=PAD,
                               dilation=DIL, cast_dtype=jnp.bfloat16)

    assert out.shape == (N, Cout, H, W), out.shape
    err_f32y = float(jnp.max(jnp.abs(out_f32y - ref_bf16)))  # tight: f32 intermediate
    err_bf16y = float(jnp.max(jnp.abs(out - ref_bf16)))      # bf16 y intermediate
    err_vs_f32 = float(jnp.max(jnp.abs(out - ref_f32)))      # bf16-vs-f32 matmul
    err_tiles = float(jnp.max(jnp.abs(out - out_auto)))      # tiling/shard invariance
    assert err_f32y < 2e-3, err_f32y
    assert err_bf16y < 3e-2, err_bf16y
    assert err_vs_f32 < 6e-2, err_vs_f32
    assert err_tiles < 1e-4, err_tiles
    print("KERNEL_OK")
</pallas_src>

<mosaic_0001>
module attributes {stable_mosaic.version = 11 : i64} {
  func.func @_conv_stats_kernel(%arg0: i32, %arg1: i32, %arg2: i32, %arg3: memref<1x18x18x8xbf16, #tpu.memory_space<vmem>>, %arg4: memref<72x128xbf16, #tpu.memory_space<vmem>>, %arg5: memref<1x64x128xbf16, #tpu.memory_space<vmem>>, %arg6: memref<1x1x2x128xf32, #tpu.memory_space<vmem>>) attributes {dimension_semantics = [#tpu.dimension_semantics<parallel>, #tpu.dimension_semantics<parallel>, #tpu.dimension_semantics<arbitrary>], iteration_bounds = array<i64: 2, 2, 2>, scalar_prefetch = 0 : i64, scratch_operands = 0 : i64, tpu.core_type = #tpu.core_type<tc>, window_params = [{transform_indices = @transform_0, window_bounds = array<i64: 1, 18, 18, 8>}, {pipeline_mode = #tpu.pipeline_mode<synchronous>, transform_indices = @transform_1, window_bounds = array<i64: 72, 128>}, {transform_indices = @transform_2, window_bounds = array<i64: 1, 64, 128>}, {transform_indices = @transform_3, window_bounds = array<i64: 1, 1, 2, 128>}]} {
    %c2_i32 = arith.constant 2 : i32
    %0 = arith.muli %arg1, %c2_i32 : i32
    %1 = arith.addi %0, %arg2 : i32
    %c4_i32 = arith.constant 4 : i32
    %2 = arith.muli %1, %c4_i32 : i32
    %3 = tpu.assume_multiple %2, 4 : i32
    %c0_i32 = arith.constant 0 : i32
    %4 = arith.addi %3, %c0_i32 : i32
    %c0 = arith.constant 0 : index
    %5 = arith.index_cast %4 : i32 to index
    %c0_0 = arith.constant 0 : index
    %c0_1 = arith.constant 0 : index
    %6 = vector.load %arg3[%c0, %5, %c0_0, %c0_1] : memref<1x18x18x8xbf16, #tpu.memory_space<vmem>>, vector<1x4x16x8xbf16>
    %7 = vector.shape_cast %6 : vector<1x4x16x8xbf16> to vector<4x16x8xbf16>
    %8 = vector.shape_cast %7 : vector<4x16x8xbf16> to vector<64x8xbf16>
    %c0_i32_2 = arith.constant 0 : i32
    %9 = arith.addi %3, %c0_i32_2 : i32
    %c0_3 = arith.constant 0 : index
    %10 = arith.index_cast %9 : i32 to index
    %c1 = arith.constant 1 : index
    %c0_4 = arith.constant 0 : index
    %11 = vector.load %arg3[%c0_3, %10, %c1, %c0_4] : memref<1x18x18x8xbf16, #tpu.memory_space<vmem>>, vector<1x4x16x8xbf16>
    %12 = vector.shape_cast %11 : vector<1x4x16x8xbf16> to vector<4x16x8xbf16>
    %13 = vector.shape_cast %12 : vector<4x16x8xbf16> to vector<64x8xbf16>
    %c0_i32_5 = arith.constant 0 : i32
    %14 = arith.addi %3, %c0_i32_5 : i32
    %c0_6 = arith.constant 0 : index
    %15 = arith.index_cast %14 : i32 to index
    %c2 = arith.constant 2 : index
    %c0_7 = arith.constant 0 : index
    %16 = vector.load %arg3[%c0_6, %15, %c2, %c0_7] : memref<1x18x18x8xbf16, #tpu.memory_space<vmem>>, vector<1x4x16x8xbf16>
    %17 = vector.shape_cast %16 : vector<1x4x16x8xbf16> to vector<4x16x8xbf16>
    %18 = vector.shape_cast %17 : vector<4x16x8xbf16> to vector<64x8xbf16>
    %c1_i32 = arith.constant 1 : i32
    %19 = arith.addi %3, %c1_i32 : i32
    %c0_8 = arith.constant 0 : index
    %20 = arith.index_cast %19 : i32 to index
    %c0_9 = arith.constant 0 : index
    %c0_10 = arith.constant 0 : index
    %21 = vector.load %arg3[%c0_8, %20, %c0_9, %c0_10] : memref<1x18x18x8xbf16, #tpu.memory_space<vmem>>, vector<1x4x16x8xbf16>
    %22 = vector.shape_cast %21 : vector<1x4x16x8xbf16> to vector<4x16x8xbf16>
    %23 = vector.shape_cast %22 : vector<4x16x8xbf16> to vector<64x8xbf16>
    %c1_i32_11 = arith.constant 1 : i32
    %24 = arith.addi %3, %c1_i32_11 : i32
    %c0_12 = arith.constant 0 : index
    %25 = arith.index_cast %24 : i32 to index
    %c1_13 = arith.constant 1 : index
    %c0_14 = arith.constant 0 : index
    %26 = vector.load %arg3[%c0_12, %25, %c1_13, %c0_14] : memref<1x18x18x8xbf16, #tpu.memory_space<vmem>>, vector<1x4x16x8xbf16>
    %27 = vector.shape_cast %26 : vector<1x4x16x8xbf16> to vector<4x16x8xbf16>
    %28 = vector.shape_cast %27 : vector<4x16x8xbf16> to vector<64x8xbf16>
    %c1_i32_15 = arith.constant 1 : i32
    %29 = arith.addi %3, %c1_i32_15 : i32
    %c0_16 = arith.constant 0 : index
    %30 = arith.index_cast %29 : i32 to index
    %c2_17 = arith.constant 2 : index
    %c0_18 = arith.constant 0 : index
    %31 = vector.load %arg3[%c0_16, %30, %c2_17, %c0_18] : memref<1x18x18x8xbf16, #tpu.memory_space<vmem>>, vector<1x4x16x8xbf16>
    %32 = vector.shape_cast %31 : vector<1x4x16x8xbf16> to vector<4x16x8xbf16>
    %33 = vector.shape_cast %32 : vector<4x16x8xbf16> to vector<64x8xbf16>
    %c2_i32_19 = arith.constant 2 : i32
    %34 = arith.addi %3, %c2_i32_19 : i32
    %c0_20 = arith.constant 0 : index
    %35 = arith.index_cast %34 : i32 to index
    %c0_21 = arith.constant 0 : index
    %c0_22 = arith.constant 0 : index
    %36 = vector.load %arg3[%c0_20, %35, %c0_21, %c0_22] : memref<1x18x18x8xbf16, #tpu.memory_space<vmem>>, vector<1x4x16x8xbf16>
    %37 = vector.shape_cast %36 : vector<1x4x16x8xbf16> to vector<4x16x8xbf16>
    %38 = vector.shape_cast %37 : vector<4x16x8xbf16> to vector<64x8xbf16>
    %c2_i32_23 = arith.constant 2 : i32
    %39 = arith.addi %3, %c2_i32_23 : i32
    %c0_24 = arith.constant 0 : index
    %40 = arith.index_cast %39 : i32 to index
    %c1_25 = arith.constant 1 : index
    %c0_26 = arith.constant 0 : index
    %41 = vector.load %arg3[%c0_24, %40, %c1_25, %c0_26] : memref<1x18x18x8xbf16, #tpu.memory_space<vmem>>, vector<1x4x16x8xbf16>
    %42 = vector.shape_cast %41 : vector<1x4x16x8xbf16> to vector<4x16x8xbf16>
    %43 = vector.shape_cast %42 : vector<4x16x8xbf16> to vector<64x8xbf16>
    %c2_i32_27 = arith.constant 2 : i32
    %44 = arith.addi %3, %c2_i32_27 : i32
    %c0_28 = arith.constant 0 : index
    %45 = arith.index_cast %44 : i32 to index
    %c2_29 = arith.constant 2 : index
    %c0_30 = arith.constant 0 : index
    %46 = vector.load %arg3[%c0_28, %45, %c2_29, %c0_30] : memref<1x18x18x8xbf16, #tpu.memory_space<vmem>>, vector<1x4x16x8xbf16>
    %47 = vector.shape_cast %46 : vector<1x4x16x8xbf16> to vector<4x16x8xbf16>
    %48 = vector.shape_cast %47 : vector<4x16x8xbf16> to vector<64x8xbf16>
    %49 = tpu.concatenate %8, %13, %18, %23, %28, %33, %38, %43, %48 in 1 : vector<64x8xbf16>, vector<64x8xbf16>, vector<64x8xbf16>, vector<64x8xbf16>, vector<64x8xbf16>, vector<64x8xbf16>, vector<64x8xbf16>, vector<64x8xbf16>, vector<64x8xbf16> -> vector<64x72xbf16>
    %c0_31 = arith.constant 0 : index
    %c0_32 = arith.constant 0 : index
    %50 = vector.load %arg4[%c0_31, %c0_32] : memref<72x128xbf16, #tpu.memory_space<vmem>>, vector<72x128xbf16>
    %cst = arith.constant dense<0.000000e+00> : vector<64x128xf32>
    %51 = tpu.matmul %49, %50, %cst {dimension_numbers = #tpu.dot_dimension_numbers<[1], [0], [0], [1], [0, 0, 1, 1], [], []>} : vector<64x72xbf16>, vector<72x128xbf16>, vector<64x128xf32> -> vector<64x128xf32>
    %52 = arith.truncf %51 : vector<64x128xf32> to vector<64x128xbf16>
    %c0_33 = arith.constant 0 : index
    %c0_34 = arith.constant 0 : index
    %c0_35 = arith.constant 0 : index
    %53 = vector.load %arg5[%c0_33, %c0_34, %c0_35] : memref<1x64x128xbf16, #tpu.memory_space<vmem>>, vector<1x64x128xbf16>
    %54 = vector.shape_cast %53 : vector<1x64x128xbf16> to vector<64x128xbf16>
    %55 = vector.shape_cast %52 : vector<64x128xbf16> to vector<1x64x128xbf16>
    tpu.vector_store %arg5[%c0_33, %c0_34, %c0_35], %55 {strides = array<i32>} : memref<1x64x128xbf16, #tpu.memory_space<vmem>>, vector<1x64x128xbf16>,
    %cst_36 = arith.constant dense<0.000000e+00> : vector<128xf32>
    %56 = vector.multi_reduction <add>, %51, %cst_36 [0] : vector<64x128xf32> to vector<128xf32>
    %57 = vector.shape_cast %56 : vector<128xf32> to vector<1x128xf32>
    %cst_37 = arith.constant 1.562500e-02 : f32
    %58 = vector.broadcast %cst_37 : f32 to vector<1x128xf32>
    %59 = arith.mulf %57, %58 : vector<1x128xf32>
    %60 = vector.broadcast %59 : vector<1x128xf32> to vector<64x128xf32>
    %61 = arith.subf %51, %60 : vector<64x128xf32>
    %62 = arith.mulf %61, %61 : vector<64x128xf32>
    %cst_38 = arith.constant dense<0.000000e+00> : vector<128xf32>
    %63 = vector.multi_reduction <add>, %62, %cst_38 [0] : vector<64x128xf32> to vector<128xf32>
    %64 = vector.shape_cast %63 : vector<128xf32> to vector<1x128xf32>
    %c0_i32_39 = arith.constant 0 : i32
    %65 = arith.cmpi eq, %arg2, %c0_i32_39 : i32
    %66 = arith.extui %65 : i1 to i32
    %c0_i32_40 = arith.constant 0 : i32
    %67 = arith.cmpi ne, %66, %c0_i32_40 : i32
    scf.if %67 {
      %c0_43 = arith.constant 0 : index
      %c0_44 = arith.constant 0 : index
      %c0_45 = arith.constant 0 : index
      %c0_46 = arith.constant 0 : index
      %71 = vector.load %arg6[%c0_43, %c0_44, %c0_45, %c0_46] : memref<1x1x2x128xf32, #tpu.memory_space<vmem>>, vector<1x1x1x128xf32>
      %72 = vector.shape_cast %71 : vector<1x1x1x128xf32> to vector<1x128xf32>
      %73 = vector.shape_cast %59 : vector<1x128xf32> to vector<1x1x1x128xf32>
      tpu.vector_store %arg6[%c0_43, %c0_44, %c0_45, %c0_46], %73 {strides = array<i32>} : memref<1x1x2x128xf32, #tpu.memory_space<vmem>>, vector<1x1x1x128xf32>,
      %c0_47 = arith.constant 0 : index
      %c0_48 = arith.constant 0 : index
      %c1_49 = arith.constant 1 : index
      %c0_50 = arith.constant 0 : index
      %74 = vector.load %arg6[%c0_47, %c0_48, %c1_49, %c0_50] : memref<1x1x2x128xf32, #tpu.memory_space<vmem>>, vector<1x1x1x128xf32>
      %75 = vector.shape_cast %74 : vector<1x1x1x128xf32> to vector<1x128xf32>
      %76 = vector.shape_cast %64 : vector<1x128xf32> to vector<1x1x1x128xf32>
      tpu.vector_store %arg6[%c0_47, %c0_48, %c1_49, %c0_50], %76 {strides = array<i32>} : memref<1x1x2x128xf32, #tpu.memory_space<vmem>>, vector<1x1x1x128xf32>,
    } else {
    }
    %c0_i32_41 = arith.constant 0 : i32
    %68 = arith.cmpi ne, %arg2, %c0_i32_41 : i32
    %69 = arith.extui %68 : i1 to i32
    %c0_i32_42 = arith.constant 0 : i32
    %70 = arith.cmpi ne, %69, %c0_i32_42 : i32
    scf.if %70 {
      %c64_i32 = arith.constant 64 : i32
      %71 = arith.muli %arg2, %c64_i32 : i32
      %72 = arith.sitofp %71 : i32 to f32
      %cst_43 = arith.constant 6.400000e+01 : f32
      %73 = arith.addf %72, %cst_43 : f32
      %c0_44 = arith.constant 0 : index
      %c0_45 = arith.constant 0 : index
      %c0_46 = arith.constant 0 : index
      %c0_47 = arith.constant 0 : index
      %74 = vector.load %arg6[%c0_44, %c0_45, %c0_46, %c0_47] : memref<1x1x2x128xf32, #tpu.memory_space<vmem>>, vector<1x1x1x128xf32>
      %75 = vector.shape_cast %74 : vector<1x1x1x128xf32> to vector<1x128xf32>
      %76 = arith.subf %59, %75 : vector<1x128xf32>
      %cst_48 = arith.constant 6.400000e+01 : f32
      %77 = arith.divf %cst_48, %73 : f32
      %78 = vector.broadcast %77 : f32 to vector<1x128xf32>
      %79 = arith.mulf %76, %78 : vector<1x128xf32>
      %80 = arith.addf %75, %79 : vector<1x128xf32>
      %c0_49 = arith.constant 0 : index
      %c0_50 = arith.constant 0 : index
      %c0_51 = arith.constant 0 : index
      %c0_52 = arith.constant 0 : index
      %81 = vector.load %arg6[%c0_49, %c0_50, %c0_51, %c0_52] : memref<1x1x2x128xf32, #tpu.memory_space<vmem>>, vector<1x1x1x128xf32>
      %82 = vector.shape_cast %81 : vector<1x1x1x128xf32> to vector<1x128xf32>
      %83 = vector.shape_cast %80 : vector<1x128xf32> to vector<1x1x1x128xf32>
      tpu.vector_store %arg6[%c0_49, %c0_50, %c0_51, %c0_52], %83 {strides = array<i32>} : memref<1x1x2x128xf32, #tpu.memory_space<vmem>>, vector<1x1x1x128xf32>,
      %c0_53 = arith.constant 0 : index
      %c0_54 = arith.constant 0 : index
      %c1_55 = arith.constant 1 : index
      %c0_56 = arith.constant 0 : index
      %84 = vector.load %arg6[%c0_53, %c0_54, %c1_55, %c0_56] : memref<1x1x2x128xf32, #tpu.memory_space<vmem>>, vector<1x1x1x128xf32>
      %85 = vector.shape_cast %84 : vector<1x1x1x128xf32> to vector<1x128xf32>
      %86 = arith.addf %85, %64 : vector<1x128xf32>
      %87 = arith.mulf %76, %76 : vector<1x128xf32>
      %cst_57 = arith.constant 6.400000e+01 : f32
      %88 = arith.mulf %72, %cst_57 : f32
      %89 = arith.divf %88, %73 : f32
      %90 = vector.broadcast %89 : f32 to vector<1x128xf32>
      %91 = arith.mulf %87, %90 : vector<1x128xf32>
      %92 = arith.addf %86, %91 : vector<1x128xf32>
      %c0_58 = arith.constant 0 : index
      %c0_59 = arith.constant 0 : index
      %c1_60 = arith.constant 1 : index
      %c0_61 = arith.constant 0 : index
      %93 = vector.load %arg6[%c0_58, %c0_59, %c1_60, %c0_61] : memref<1x1x2x128xf32, #tpu.memory_space<vmem>>, vector<1x1x1x128xf32>
      %94 = vector.shape_cast %93 : vector<1x1x1x128xf32> to vector<1x128xf32>
      %95 = vector.shape_cast %92 : vector<1x128xf32> to vector<1x1x1x128xf32>
      tpu.vector_store %arg6[%c0_58, %c0_59, %c1_60, %c0_61], %95 {strides = array<i32>} : memref<1x1x2x128xf32, #tpu.memory_space<vmem>>, vector<1x1x1x128xf32>,
    } else {
    }
    return
  }
  func.func @transform_0(%arg0: i32, %arg1: i32, %arg2: i32) -> (i32, i32, i32, i32) {
    %c0_i32 = arith.constant 0 : i32
    %c0_i32_0 = arith.constant 0 : i32
    %c0_i32_1 = arith.constant 0 : i32
    %c0_i32_2 = arith.constant 0 : i32
    return %arg0, %c0_i32, %c0_i32_0, %c0_i32_1 : i32, i32, i32, i32
  }
  func.func @transform_1(%arg0: i32, %arg1: i32, %arg2: i32) -> (i32, i32) {
    %c0_i32 = arith.constant 0 : i32
    %c0_i32_0 = arith.constant 0 : i32
    %c0_i32_1 = arith.constant 0 : i32
    return %c0_i32, %c0_i32_0 : i32, i32
  }
  func.func @transform_2(%arg0: i32, %arg1: i32, %arg2: i32) -> (i32, i32, i32) {
    %c2_i32 = arith.constant 2 : i32
    %0 = arith.muli %arg1, %c2_i32 : i32
    %1 = arith.addi %0, %arg2 : i32
    %c0_i32 = arith.constant 0 : i32
    %c0_i32_0 = arith.constant 0 : i32
    return %arg0, %1, %c0_i32 : i32, i32, i32
  }
  func.func @transform_3(%arg0: i32, %arg1: i32, %arg2: i32) -> (i32, i32, i32, i32) {
    %c0_i32 = arith.constant 0 : i32
    %c0_i32_0 = arith.constant 0 : i32
    %c0_i32_1 = arith.constant 0 : i32
    return %arg0, %arg1, %c0_i32, %c0_i32_0 : i32, i32, i32, i32
  }
}

module attributes {stable_mosaic.version = 11 : i64} {
  func.func @_bn_relu_kernel(%arg0: i32, %arg1: i32, %arg2: memref<1x64x128xbf16, #tpu.memory_space<vmem>>, %arg3: memref<1x128xf32, #tpu.memory_space<vmem>>, %arg4: memref<1x128xf32, #tpu.memory_space<vmem>>, %arg5: memref<1x64x128xf32, #tpu.memory_space<vmem>>) attributes {dimension_semantics = [#tpu.dimension_semantics<parallel>, #tpu.dimension_semantics<parallel>], iteration_bounds = array<i64: 2, 4>, scalar_prefetch = 0 : i64, scratch_operands = 0 : i64, tpu.core_type = #tpu.core_type<tc>, window_params = [{transform_indices = @transform_0, window_bounds = array<i64: 1, 64, 128>}, {pipeline_mode = #tpu.pipeline_mode<synchronous>, transform_indices = @transform_1, window_bounds = array<i64: 1, 128>}, {pipeline_mode = #tpu.pipeline_mode<synchronous>, transform_indices = @transform_2, window_bounds = array<i64: 1, 128>}, {transform_indices = @transform_3, window_bounds = array<i64: 1, 64, 128>}]} {
    %c0 = arith.constant 0 : index
    %c0_0 = arith.constant 0 : index
    %c0_1 = arith.constant 0 : index
    %0 = vector.load %arg2[%c0, %c0_0, %c0_1] : memref<1x64x128xbf16, #tpu.memory_space<vmem>>, vector<1x64x128xbf16>
    %1 = vector.shape_cast %0 : vector<1x64x128xbf16> to vector<64x128xbf16>
    %2 = arith.extf %1 : vector<64x128xbf16> to vector<64x128xf32>
    %c0_2 = arith.constant 0 : index
    %c0_3 = arith.constant 0 : index
    %3 = vector.load %arg3[%c0_2, %c0_3] : memref<1x128xf32, #tpu.memory_space<vmem>>, vector<1x128xf32>
    %4 = vector.broadcast %3 : vector<1x128xf32> to vector<64x128xf32>
    %5 = arith.mulf %2, %4 : vector<64x128xf32>
    %c0_4 = arith.constant 0 : index
    %c0_5 = arith.constant 0 : index
    %6 = vector.load %arg4[%c0_4, %c0_5] : memref<1x128xf32, #tpu.memory_space<vmem>>, vector<1x128xf32>
    %7 = vector.broadcast %6 : vector<1x128xf32> to vector<64x128xf32>
    %8 = arith.addf %5, %7 : vector<64x128xf32>
    %cst = arith.constant 0.000000e+00 : f32
    %9 = vector.broadcast %cst : f32 to vector<64x128xf32>
    %10 = arith.maximumf %8, %9 : vector<64x128xf32>
    %c0_6 = arith.constant 0 : index
    %c0_7 = arith.constant 0 : index
    %c0_8 = arith.constant 0 : index
    %11 = vector.load %arg5[%c0_6, %c0_7, %c0_8] : memref<1x64x128xf32, #tpu.memory_space<vmem>>, vector<1x64x128xf32>
    %12 = vector.shape_cast %11 : vector<1x64x128xf32> to vector<64x128xf32>
    %13 = vector.shape_cast %10 : vector<64x128xf32> to vector<1x64x128xf32>
    tpu.vector_store %arg5[%c0_6, %c0_7, %c0_8], %13 {strides = array<i32>} : memref<1x64x128xf32, #tpu.memory_space<vmem>>, vector<1x64x128xf32>,
    return
  }
  func.func @transform_0(%arg0: i32, %arg1: i32) -> (i32, i32, i32) {
    %c0_i32 = arith.constant 0 : i32
    %c0_i32_0 = arith.constant 0 : i32
    return %arg0, %arg1, %c0_i32 : i32, i32, i32
  }
  func.func @transform_1(%arg0: i32, %arg1: i32) -> (i32, i32) {
    %c0_i32 = arith.constant 0 : i32
    %c0_i32_0 = arith.constant 0 : i32
    %c0_i32_1 = arith.constant 0 : i32
    return %c0_i32, %c0_i32_0 : i32, i32
  }
  func.func @transform_2(%arg0: i32, %arg1: i32) -> (i32, i32) {
    %c0_i32 = arith.constant 0 : i32
    %c0_i32_0 = arith.constant 0 : i32
    %c0_i32_1 = arith.constant 0 : i32
    return %c0_i32, %c0_i32_0 : i32, i32
  }
  func.func @transform_3(%arg0: i32, %arg1: i32) -> (i32, i32, i32) {
    %c0_i32 = arith.constant 0 : i32
    %c0_i32_0 = arith.constant 0 : i32
    return %arg0, %arg1, %c0_i32 : i32, i32, i32
  }
}

</mosaic_0001>

<bundles_post_ra>
// kernel: conv_bn_act.3
= control target key start
LH: loop header
LB: loop body
LE: loop exit
PB: predicated region body
PF: predicated region fallthrough
CT: control target
= control target key end

     0   :  { %s496_s12 = smov 0   ;;  %s498_s13 = smov 0   ;;  %s557_s0 = inlined_call_operand.vmem [shape: bf16[2,256,128], index: 0, kind: input, shape index: {}]   ;;  %s558_s1 = inlined_call_operand.vmem [shape: f32[1,128], index: 1, kind: input, shape index: {}]   ;;  %s559_s2 = inlined_call_operand.vmem [shape: f32[1,128], index: 2, kind: input, shape index: {}]   ;;  %s560_s3 = inlined_call_operand.vmem [shape: f32[2,256,128], index: 3, kind: output, shape index: {}]  }
   0x1   :  { %s500_s14 = smov 0   ;;  %s502_s15 = smov 0  }
   0x2   :  { %s504_s16 = smov 0  }
   0x3 LB: > { %s22_s17 = sadd.s32 1, %s466_s14  ;;  %s25_s18 = sadd.s32 1, %s470_s15  ;;  %s474_s16 = sphi %s504_s16, %s13_s16   ;;  %s470_s15 = sphi %s502_s15, %s564_s15   ;;  %s466_s14 = sphi %s500_s14, %s563_s14   ;;  %s462_s13 = sphi %s498_s13, %s562_s13   ;;  %s458_s12 = sphi %s496_s12, %s561_s12  }
   0x4   : > { %p23_p0 = scmp.ge.s32.totalorder %s22_s17, 4  ;;  %p366_p1 = scmp.ge.s32.totalorder %s474_s16, 1 }
   0x5   : > { %p158_p2 = scmp.lt.s32.totalorder %s474_s16, 9 }
   0x6   : > { %s566_s17 = smov (%p23_p0, %s22_s17), 0  ;;  %s568_s18 = smov (!%p23_p0, %s25_s18), %s470_s15 }
   0x7   : > { %p159_p3 = pnand %p366_p1, %p158_p2  ;;  %p27_p4 = scmp.ge.s32.totalorder %s568_s18, 2 }
   0x8   : > { %s367_s19 = sshll.u32 (!%p159_p3), %s458_s12, 3  ;;  %p191_p5 = scmp.lt.s32.totalorder (!%p159_p3), %s462_s13, 1 }
   0x9   : > { %s570_s18 = smov (%p27_p4, %s568_s18), 0  ;;  %162 = sbr.rel (%p159_p3) target bundleno = 32 (0x20), region = 32 }
   0xa   : > { %p193_p6 = scmp.lt.s32.totalorder (!%p159_p3), %s367_s19, 31 }
   0xe   : > { %s572_s13 = smov (!%p191_p5, %s462_s13), 1  ;;  %s574_s19 = smov (!%p193_p6, %s367_s19), 31  ;;  %v373_v0 = vld [vmem:[%s558_s1] ss:$0 sm:$0xff] }
   0xf   : > { %s368_s20 = sshll.u32 %s572_s13, 5  ;;  %v374_v9 = vld [vmem:[%s559_s2] ss:$0 sm:$0xff] }
  0x10   : > { %s526_s21 = sadd.s32 %s368_s20, %s574_s19 }
  0x11   : > { %s369_s22 = sshll.u32 %s526_s21, 2  ;;  %s372_s30 = sshll.u32 %s526_s21, 3 }
  0x12   : > { %s198_s25 = scalar_lea.vmem %s557_s0, %s369_s22  ;;  %s208_s6 = scalar_lea.vmem %s560_s3, %s372_s30 }
  0x13   : > { %v378_v1 = vld [vmem:[%s198_s25] sm:$0xff]   ;;  %v393_v2 = vld [vmem:[%s198_s25 + $0x8] sm:$0xff]   ;;  %v394_v3 = vld [vmem:[%s198_s25 + $0x10] sm:$0xff]  }
  0x14   : > { %v379_v4 = vunpack.c.l.bf16 %v378_v1  ;;  %v380_v5 = vunpack.c.h.bf16 %v378_v1  ;;  %v383_v6 = vunpack.c.l.bf16 %v393_v2  ;;  %v384_v7 = vunpack.c.h.bf16 %v393_v2  ;;  %v395_v8 = vld [vmem:[%s198_s25 + $0x18] sm:$0xff]  }
  0x15   : > { %v387_v10 = vunpack.c.l.bf16 %v394_v3  ;;  %v388_v11 = vunpack.c.h.bf16 %v394_v3  ;;  %v391_v12 = vunpack.c.l.bf16 %v395_v8  ;;  %v392_v13 = vunpack.c.h.bf16 %v395_v8 }
  0x16   : > { %v233_v14 = vmul.f32 %v379_v4, %v373_v0  ;;  %v234_v15 = vmul.f32 %v380_v5, %v373_v0  ;;  %v235_v16 = vmul.f32 %v383_v6, %v373_v0  ;;  %v236_v17 = vmul.f32 %v384_v7, %v373_v0 }
  0x17   : > { %v237_v18 = vmul.f32 %v387_v10, %v373_v0  ;;  %v238_v19 = vmul.f32 %v388_v11, %v373_v0  ;;  %v239_v20 = vmul.f32 %v391_v12, %v373_v0  ;;  %v240_v21 = vmul.f32 %v392_v13, %v373_v0 }
  0x18   : > { %v248_v22 = vadd.f32 %v374_v9, %v233_v14  ;;  %v249_v23 = vadd.f32 %v374_v9, %v234_v15  ;;  %v250_v24 = vadd.f32 %v374_v9, %v235_v16  ;;  %v251_v25 = vadd.f32 %v374_v9, %v236_v17 }
  0x19   : > { %v252_v26 = vadd.f32 %v374_v9, %v237_v18  ;;  %v253_v27 = vadd.f32 %v374_v9, %v238_v19  ;;  %v254_v28 = vadd.f32 %v374_v9, %v239_v20  ;;  %v255_v29 = vadd.f32 %v374_v9, %v240_v21 }
  0x1a   : > { %v256_v30 = vmax.f32 %v248_v22, 0.0  ;;  %v257_v31 = vmax.f32 %v249_v23, 0.0  ;;  %v258_v32 = vmax.f32 %v250_v24, 0.0  ;;  %v259_v33 = vmax.f32 %v251_v25, 0.0 }
  0x1b   : > { %v260_v34 = vmax.f32 %v252_v26, 0.0  ;;  %v261_v35 = vmax.f32 %v253_v27, 0.0  ;;  %v262_v36 = vmax.f32 %v254_v28, 0.0  ;;  %v263_v37 = vmax.f32 %v255_v29, 0.0 }
  0x1c   : > { %264 = vst [vmem:[%s208_s6] sm:$0xff] %v256_v30  ;;  %265 = vst [vmem:[%s208_s6 + $0x8] sm:$0xff] %v257_v31 }
  0x1d   : > { %266 = vst [vmem:[%s208_s6 + $0x10] sm:$0xff] %v258_v32  ;;  %267 = vst [vmem:[%s208_s6 + $0x18] sm:$0xff] %v259_v33 }
  0x1e   : > { %268 = vst [vmem:[%s208_s6 + $0x20] sm:$0xff] %v260_v34  ;;  %269 = vst [vmem:[%s208_s6 + $0x28] sm:$0xff] %v261_v35 }
  0x1f   : > { %270 = vst [vmem:[%s208_s6 + $0x30] sm:$0xff] %v262_v36  ;;  %271 = vst [vmem:[%s208_s6 + $0x38] sm:$0xff] %v263_v37 }
  0x20 PF: > { %s13_s16 = sadd.s32 1, %s474_s16   ;;  %s561_s12 = smov %s466_s14 }
  0x21   : > { %p10_p7 = scmp.ge.s32.totalorder %s13_s16, 10   ;;  %s562_s13 = smov %s470_s15 }
  0x22   : > { %s563_s14 = smov %s566_s17  ;;  %s564_s15 = smov %s570_s18 }
  0x23   :  { %12 = sbr.rel (!%p10_p7) target bundleno = 3 (0x3), region = 62 }

// kernel: conv_bn_act.2
= control target key start
LH: loop header
LB: loop body
LE: loop exit
PB: predicated region body
PF: predicated region fallthrough
CT: control target
= control target key end

     0   :  { %s1727_s12 = smov 0   ;;  %s1729_s13 = smov 0   ;;  %s2198_s0 = inlined_call_operand.vmem [shape: bf16[2,18,18,8], index: 0, kind: input, shape index: {}]   ;;  %s2199_s1 = inlined_call_operand.vmem [shape: bf16[72,128], index: 1, kind: input, shape index: {}]   ;;  %s2200_s2 = inlined_call_operand.vmem [shape: bf16[2,256,128], index: 2, kind: output, shape index: {0}]   ;;  %s2201_s3 = inlined_call_operand.vmem [shape: f32[2,2,2,128], index: 3, kind: output, shape index: {1}]  }
   0x1   :  { %s1731_s14 = smov 0   ;;  %s1733_s15 = smov 0  }
   0x2   :  { %s1735_s16 = smov 0   ;;  %s1737_s17 = smov 0  }
   0x3   :  { %s1739_s18 = smov 0  }
   0x4 LB: > { %s26_s19 = sadd.s32 1, %s1685_s15  ;;  %s29_s20 = sadd.s32 1, %s1689_s16  ;;  %s1697_s18 = sphi %s1739_s18, %s14_s18   ;;  %s1693_s17 = sphi %s1737_s17, %s2211_s17   ;;  %s1689_s16 = sphi %s1735_s16, %s2210_s16   ;;  %s1685_s15 = sphi %s1733_s15, %s2209_s15   ;;  %s1681_s14 = sphi %s1731_s14, %s2208_s14   ;;  %s1677_s13 = sphi %s1729_s13, %s2207_s13   ;;  %s1673_s12 = sphi %s1727_s12, %s2206_s12  }
   0x5   : > { %p27_p0 = scmp.ge.s32.totalorder %s26_s19, 2  ;;  %p1366_p1 = scmp.ge.s32.totalorder %s1697_s18, 1 }
   0x6   : > { %p167_p2 = scmp.lt.s32.totalorder %s1697_s18, 9  ;;  %s33_s21 = sadd.s32 1, %s1693_s17 }
   0x7   : > { %s2213_s19 = smov (%p27_p0, %s26_s19), 0  ;;  %s2215_s20 = smov (!%p27_p0, %s29_s20), %s1689_s16 }
   0x8   : > { %p168_p3 = pnand %p1366_p1, %p167_p2  ;;  %p31_p4 = scmp.ge.s32.totalorder %s2215_s20, 2 }
   0x9   : > { %p205_p6 = scmp.lt.s32.totalorder (!%p168_p3), %s1681_s14, 1  ;;  %s1368_s22 = sshll.u32 (!%p168_p3), %s1677_s13, 1 }
   0xa   : > { %s2217_s20 = smov (%p31_p4, %s2215_s20), 0  ;;  %s2219_s21 = smov (!%p31_p4, %s33_s21), %s1693_s17 }
   0xb   : > { %p35_p5 = scmp.ge.s32.totalorder %s2219_s21, 2  ;;  %171 = sbr.rel (%p168_p3) target bundleno = 550 (0x226), region = 28 }
   0xc   : > { %s1772_s23 = sadd.s32 (!%p168_p3), %s1673_s12, %s1368_s22  ;;  %p226_p7 = scmp.lt.s32.totalorder (!%p168_p3), %s1677_s13, 1 }
   0xd   : > { %s2221_s21 = smov (%p35_p5, %s2219_s21), 0  ;;  %s1486_s27 = smul.u32 (!%p168_p3), 48, %s1772_s23 }
   0xe   : > { %s1699_s9 = smov (!%p168_p3), 24   ;;  %s1700_s10 = smov (!%p168_p3), 48  }
   0xf   : > { %s1701_s11 = smov (!%p168_p3), 40   ;;  %s1703_s22 = smov (!%p168_p3), 8  }
  0x10   : > { %s2223_s14 = smov (!%p205_p6, %s1681_s14), 1  ;;  %s2225_s13 = smov (!%p226_p7, %s1677_s13), 1  ;;  %vm366_vm0 = vcmask 1042432   ;;  %vm367_vm1 = vcmask 1046532   ;;  %vm251_vm2 = vsmask.f32 3328 }
  0x11   : > { %s1557_s24 = smul.u32 216, %s2223_s14  ;;  %s1372_s25 = sshll.u32 %s2223_s14, 1  ;;  %vm252_vm3 = vsmask.f32 7440  ;;  %vm1838_vm4 = vmor %vm366_vm0, %vm367_vm1  ;;  %vm1014_vm6 = vcmask 1043456   ;;  %v1637_v41 = vld [vmem:[%s2199_s1 + $0x8] sm:$0xff]  }
  0x12   : > { %s229_s26 = sadd.s32 %s1372_s25, %s2225_s13  ;;  %s1702_s13 = smov 16   ;;  %vm1892_vm5 = vmor %vm251_vm2, %vm252_vm3  ;;  %vm893_vm7 = vcmask 64512   ;;  %vm906_vm8 = vcmask 130048   ;;  %vm915_vm9 = vcmask 195584   ;;  %vm924_vm10 = vcmask 261120  }
  0x13   : > { %s209_s30 = scalar_lea.vmem %s2198_s0, %s1557_s24  ;;  %s1373_s4 = sshll.u32 %s229_s26, 1  ;;  %vm933_vm11 = vcmask 326656   ;;  %vm942_vm12 = vcmask 392192   ;;  %vm951_vm13 = vcmask 457728   ;;  %vm960_vm14 = vcmask 523264  }
  0x14   : > { %s1785_s7 = scalar_lea.vmem %s2201_s3, %s1373_s4  ;;  %s1787_s8 = scalar_lea.vmem %s209_s30, %s1486_s27  ;;  %vm1005_vm15 = vcmask 588800  }
  0x15   : > { %v1387_v0 = vld [vmem:[%s1787_s8 + $0x18] sm:$0xf]  ;;  %v1791_v1 = vld [vmem:[%s1787_s8 + $0x1c] sm:$0xf]  ;;  %v1385_v5 = vld [vmem:[%s1787_s8 + $0xc] sm:$0xf] }
  0x16   : > { %v451_v2 = vshrl.u32 %v1791_v1, 16  ;;  %v1441_v3 = vcombine.low %v1387_v0, %v1791_v1  ;;  %v438_v4 = vshrl.u32 %v1387_v0, 16  ;;  %v447_v6 = vshll.u32 %v1791_v1, 16  ;;  %v1798_v8 = vld [vmem:[%s1787_s8 + $0x10] sm:$0xf]  ;;  %s1704_s24 = smov 32  }
  0x17   : > { %v441_v7 = vshll.u32 %v1387_v0, 16  ;;  %v414_v9 = vshrl.u32 %v1385_v5, 16  ;;  %v417_v10 = vshll.u32 %v1385_v5, 16  ;;  %v423_v13 = vshll.u32 %v1798_v8, 16  ;;  %v1410_v15 = vld [vmem:[%s1787_s8 + $0x24] sm:$0xf] }
  0x18   : > { %v1800_v11 = vrot.slane %v451_v2, 4  ;;  %783 = vrot.lane.b32.xlu1 %v1441_v3, %s1699_s9  ;;  %v440_v12 = vrot.slane %v438_v4, 4  ;;  %v427_v14 = vshrl.u32 %v1798_v8, 16  ;;  %v1440_v17 = vcombine.low %v1385_v5, %v1798_v8  ;;  %v1808_v20 = vld [vmem:[%s1787_s8 + $0x28] sm:$0xf]  ;;  %s1705_s25 = smov 56  }
  0x19   : > { %v443_v16 = vrot.slane %v441_v7, 5  ;;  %v416_v18 = vrot.slane %v414_v9, 4  ;;  %v419_v19 = vrot.slane %v417_v10, 5  ;;  %v594_v22 = vshrl.u32 %v1410_v15, 16  ;;  %v1408_v25 = vld [vmem:[%s1787_s8 + $0x18] sm:$0xf] }
  0x1a   : > { %v1810_v21 = vrot.slane %v427_v14, 4  ;;  %v597_v23 = vshll.u32 %v1410_v15, 16  ;;  %v607_v24 = vshrl.u32 %v1808_v20, 16  ;;  %781 = vrot.lane.b32.xlu0 %v1440_v17, %s1699_s9  ;;  %v1453_v28 = vcombine.low %v1410_v15, %v1808_v20  ;;  %v1817_v29 = vld [vmem:[%s1787_s8 + $0x1c] sm:$0xf]  ;;  %s1706_s26 = smov 64  }
  0x1b   : > { %v444_v26 = vor.u32 %v443_v16, %v440_v12  ;;  %v420_v27 = vor.u32 %v419_v19, %v416_v18  ;;  %v570_v30 = vshrl.u32 %v1408_v25, 16  ;;  %v1820_v31 = vld [vmem:[%s1787_s8 + $0x14] sm:$0x1]  ;;  %v1822_v32 = vrot.slane %v594_v22, 4  ;;  %v1397_v36 = vld [vmem:[%s1787_s8 + $0xc] sm:$0xe] }
  0x1c   : > { %v1824_v33 = vrot.slane %v597_v23, 5  ;;  %v573_v34 = vshll.u32 %v1408_v25, 16  ;;  %v583_v35 = vshrl.u32 %v1817_v29, 16  ;;  %847 = vrot.lane.b32.xlu1 %v1453_v28, %s1700_s10  ;;  %v1452_v40 = vcombine.low %v1408_v25, %v1817_v29  ;;  %v1843_v42 = vld [vmem:[%s1787_s8 + $0x4] sm:$0xf]  ;;  %p1481_p9 = scmp.ne.s32.totalorder %s1673_s12, 0 }
  0x1d   : > { %v1828_v37 = vrot.slane %v444_v26, 4  ;;  %v1830_v38 = vrot.slane %v420_v27, 4  ;;  %v1833_v39 = vrot.slane %v570_v30, 4  ;;  %v1401_v44 = vrot.slane %v1397_v36, 9  ;;  %v247_v47 = vld [vmem:[%s1787_s8 + $0x8] sm:$0x1] }
  0x1e   : > { %v1845_v43 = vrot.slane %v573_v34, 5  ;;  %v527_v45 = vrot.slane %v1798_v8, 5  ;;  %v530_v46 = vrot.slane %v1820_v31, 5  ;;  %845 = vrot.lane.b32.xlu0 %v1452_v40, %s1700_s10  ;;  %v350_v48 = vld [vmem:[%s1787_s8] sm:$0xe]  ;;  %v371_v49 = vrot.slane %v1843_v42, 5 }
  0x1f   : > { %v374_v50 = vrot.slane %v247_v47, 5  ;;  %v1854_v51 = vld [vmem:[%s1787_s8 + $0x10] sm:$0xf]  ;;  %v600_v52 = vor.u32 %v1824_v33, %v1822_v32  ;;  %v1378_v55 = vrot.slane %v350_v48, 9  ;;  %v248_v56 = vld [vmem:[%s1787_s8 + $0x14] sm:$0x1] }
  0x20   : > { %v528_v53 = vsel %vm1838_vm4, %v1401_v44, %v527_v45  ;;  %v529_v54 = vrot.slane %v527_v45, 4  ;;  %v351_v57 = vld [vmem:[%s1787_s8 + $0xc] sm:$0xe]  ;;  %v576_v58 = vor.u32 %v1845_v43, %v1833_v39  ;;  %v373_v59 = vrot.slane %v371_v49, 4  ;;  %v1866_v63 = vld [vmem:[%s1787_s8] sm:$0xf] }
  0x21   : > { %v1379_v60 = vrot.slane %v351_v57, 9  ;;  %v378_v61 = vrot.slane %v1854_v51, 5  ;;  %v381_v62 = vrot.slane %v248_v56, 5  ;;  %v372_v2 = vsel %vm1838_vm4, %v1378_v55, %v371_v49  ;;  %v1398_v5 = vld [vmem:[%s1787_s8 + $0x18] sm:$0xe] }
  0x22   : > { %v531_v0 = vsel %vm1838_vm4, %v529_v54, %v530_v46  ;;  %v255_v3 = vshrl.u32 %v1866_v63, 16  ;;  %v258_v4 = vshll.u32 %v1866_v63, 16  ;;  %v375_v9 = vsel %vm1838_vm4, %v373_v59, %v374_v50  ;;  %v1394_v14 = vld [vmem:[%s1787_s8 + $0x20] sm:$0x1]  ;;  %v1882_v19 = vld [vmem:[%s1787_s8 + $0xc] sm:$0xf] }
  0x23   : > { %v1448_v7 = vcombine.low %v528_v53, %v531_v0  ;;  %v379_v10 = vsel %vm1838_vm4, %v1379_v60, %v378_v61  ;;  %v380_v12 = vrot.slane %v378_v61, 4  ;;  %v1436_v15 = vcombine.low %v372_v2, %v375_v9  ;;  %v1945_v33 = vld [vmem:[%s1787_s8 + $0x18] sm:$0xf] }
  0x24   : > { %v257_v16 = vrot.slane %v255_v3, 4  ;;  %v260_v17 = vrot.slane %v258_v4, 5  ;;  %v264_v18 = vshll.u32 %v1843_v42, 16  ;;  %v268_v23 = vshrl.u32 %v1843_v42, 16 }
  0x25   : > { %821 = vrot.lane.b32.xlu0 %v1448_v7, %s1701_s11  ;;  %v382_v22 = vsel %vm1838_vm4, %v380_v12, %v381_v62  ;;  %v274_v25 = vshll.u32 %v247_v47, 16  ;;  %v1402_v26 = vrot.slane %v1398_v5, 9  ;;  %757 = vrot.lane.b32.xlu1 %v1436_v15, %s1702_s13  ;;  %v534_v34 = vrot.slane %v1791_v1, 5 }
  0x26   : > { %v1437_v27 = vcombine.low %v379_v10, %v382_v22  ;;  %v261_v28 = vor.u32 %v260_v17, %v257_v16  ;;  %v266_v30 = vrot.slane %v264_v18, 5  ;;  %v270_v40 = vrot.slane %v268_v23, 4 }
  0x27   : > { %v276_v44 = vrot.slane %v274_v25, 5  ;;  %v537_v45 = vrot.slane %v1394_v14, 5  ;;  %v279_v46 = vshrl.u32 %v1882_v19, 16  ;;  %v535_v48 = vsel %vm1838_vm4, %v1402_v26, %v534_v34 }
  0x28   : > { %v262_v47 = vrot.slane %v261_v28, 4  ;;  %v536_v49 = vrot.slane %v534_v34, 4  ;;  %v282_v50 = vshll.u32 %v1882_v19, 16  ;;  %v271_v53 = vor.u32 %v270_v40, %v266_v30  ;;  %v1416_v28 = vld [vmem:[%s1787_s8 + $0x20] sm:$0x1] }
  0x29   : > { %v281_v54 = vrot.slane %v279_v46, 4  ;;  %v288_v55 = vshll.u32 %v1854_v51, 16  ;;  %v292_v57 = vshrl.u32 %v1854_v51, 16  ;;  %759 = vrot.lane.b32.xlu1 %v1437_v27, %s1702_s13  ;;  %v298_v62 = vshll.u32 %v248_v56, 16  ;;  %v1951_v46 = vld [vmem:[%s1787_s8 + $0x1c] sm:$0xf] }
  0x2a   : > { %v267_v59 = vsel %vm1892_vm5, %v262_v47, %v266_v30  ;;  %v538_v60 = vsel %vm1838_vm4, %v536_v49, %v537_v45  ;;  %v284_v61 = vrot.slane %v282_v50, 5  ;;  %v272_v0 = vrot.slane %v271_v53, 4  ;;  %v1960_v53 = vld [vmem:[%s1787_s8 + $0x20] sm:$0x1] }
  0x2b   : > { %v1449_v2 = vcombine.low %v535_v48, %v538_v60  ;;  %v290_v3 = vrot.slane %v288_v55, 5  ;;  %v294_v4 = vrot.slane %v292_v57, 4  ;;  %v300_v7 = vrot.slane %v298_v62, 5  ;;  %v1420_v60 = vld [vmem:[%s1787_s8 + $0x18] sm:$0xe] }
  0x2c   : > { %v285_v5 = vor.u32 %v284_v61, %v281_v54  ;;  %v449_v9 = vrot.slane %v447_v6, 5  ;;  %v457_v10 = vshll.u32 %v1394_v14, 16  ;;  %v277_v12 = vsel %vm1892_vm5, %v272_v0, %v276_v44 }
  0x2d   : > { %v295_v15 = vor.u32 %v294_v4, %v290_v3  ;;  %v425_v16 = vrot.slane %v423_v13, 5  ;;  %v433_v56 = vshll.u32 %v1820_v31, 16  ;;  %v1432_v17 = vcombine.low %v267_v59, %v277_v12  ;;  %823 = vrot.lane.b32.xlu1 %v1449_v2, %s1701_s11  ;;  %v1924_v31 = vld [vmem:[%s1787_s8 + $0x2c] sm:$0x1] }
  0x2e   : > { %v286_v18 = vrot.slane %v285_v5, 4  ;;  %v450_v1 = vsel %vm1892_vm5, %v1828_v37, %v449_v9  ;;  %v454_v6 = vor.u32 %v1800_v11, %v449_v9  ;;  %v459_v22 = vrot.slane %v457_v10, 5 }
  0x2f   : > { %v296_v14 = vrot.slane %v295_v15, 4  ;;  %v426_v8 = vsel %vm1892_vm5, %v1830_v38, %v425_v16  ;;  %v430_v13 = vor.u32 %v1810_v21, %v425_v16  ;;  %737 = vrot.lane.b32.xlu0 %v1432_v17, %s1703_s22  ;;  %v435_v11 = vrot.slane %v433_v56, 5  ;;  %v1975_v16 = vld [vmem:[%s1787_s8 + $0x24] sm:$0xf] }
  0x30   : > { %v291_v37 = vsel %vm1892_vm5, %v286_v18, %v290_v3  ;;  %v455_v23 = vrot.slane %v454_v6, 4  ;;  %v601_v25 = vrot.slane %v600_v52, 4  ;;  %v603_v26 = vshll.u32 %v1808_v20, 16  ;;  %v1978_v6 = vld [vmem:[%s1787_s8 + $0x28] sm:$0xf] }
  0x31   : > { %v301_v38 = vsel %vm1892_vm5, %v296_v14, %v300_v7  ;;  %v431_v21 = vrot.slane %v430_v13, 4  ;;  %v609_v27 = vrot.slane %v607_v24, 4  ;;  %v613_v40 = vshll.u32 %v1924_v31, 16 }
  0x32   : > { %v1433_v30 = vcombine.low %v291_v37, %v301_v38  ;;  %v460_v34 = vsel %vm1892_vm5, %v455_v23, %v459_v22  ;;  %v577_v32 = vrot.slane %v576_v58, 4  ;;  %v605_v45 = vrot.slane %v603_v26, 5 }
  0x33   : > { %v1445_v52 = vcombine.low %v450_v1, %v460_v34  ;;  %v436_v44 = vsel %vm1892_vm5, %v431_v21, %v435_v11  ;;  %v579_v24 = vshll.u32 %v1817_v29, 16  ;;  %v615_v48 = vrot.slane %v613_v40, 5  ;;  %v250_v11 = vld [vmem:[%s1787_s8 + $0x2c] sm:$0x1] }
  0x34   : > { %739 = vrot.lane.b32.xlu0 %v1433_v30, %s1703_s22  ;;  %v1444_v47 = vcombine.low %v426_v8, %v436_v44  ;;  %v585_v39 = vrot.slane %v583_v35, 4  ;;  %v589_v43 = vshll.u32 %v1416_v28, 16  ;;  %v606_v58 = vsel %vm1892_vm5, %v601_v25, %v605_v45 }
  0x35   : > { %803 = vrot.lane.b32.xlu1 %v1445_v52, %s1704_s24  ;;  %v610_v49 = vor.u32 %v609_v27, %v605_v45  ;;  %v581_v50 = vrot.slane %v579_v24, 5  ;;  %v303_v54 = vshrl.u32 %v1945_v33, 16  ;;  %v306_v57 = vshll.u32 %v1945_v33, 16  ;;  %v353_v52 = vld [vmem:[%s1787_s8 + $0x24] sm:$0xe] }
  0x36   : > { %v591_v55 = vrot.slane %v589_v43, 5  ;;  %v312_v59 = vshll.u32 %v1951_v46, 16  ;;  %v316_v35 = vshrl.u32 %v1951_v46, 16  ;;  %v322_v7 = vshll.u32 %v1960_v53, 16 }
  0x37   : > { %v611_v61 = vrot.slane %v610_v49, 4  ;;  %v582_v62 = vsel %vm1892_vm5, %v577_v32, %v581_v50  ;;  %v586_v0 = vor.u32 %v585_v39, %v581_v50  ;;  %v305_v2 = vrot.slane %v303_v54, 4 }
  0x38   : > { %801 = vrot.lane.b32.xlu0 %v1444_v47, %s1704_s24  ;;  %v308_v3 = vrot.slane %v306_v57, 5  ;;  %v314_v4 = vrot.slane %v312_v59, 5  ;;  %v318_v5 = vrot.slane %v316_v35, 4  ;;  %v1424_v12 = vrot.slane %v1420_v60, 9  ;;  %v352_v57 = vld [vmem:[%s1787_s8 + $0x18] sm:$0xe] }
  0x39   : > { %v616_v9 = vsel %vm1892_vm5, %v611_v61, %v615_v48  ;;  %v587_v10 = vrot.slane %v586_v0, 4  ;;  %v683_v15 = vrot.slane %v1817_v29, 5  ;;  %v324_v1 = vrot.slane %v322_v7, 5 }
  0x3a   : > { %v1457_v56 = vcombine.low %v606_v58, %v616_v9  ;;  %v309_v17 = vor.u32 %v308_v3, %v305_v2  ;;  %v319_v18 = vor.u32 %v318_v5, %v314_v4  ;;  %v686_v13 = vrot.slane %v1416_v28, 5  ;;  %v1421_v28 = vld [vmem:[%s1787_s8 + $0x24] sm:$0xe]  ;;  %v1391_v2 = vld [vmem:[%s1787_s8 + $0x30] sm:$0xf] }
  0x3b   : > { %v592_v14 = vsel %vm1892_vm5, %v587_v10, %v591_v55  ;;  %v684_v22 = vsel %vm1838_vm4, %v1424_v12, %v683_v15  ;;  %v685_v8 = vrot.slane %v683_v15, 4  ;;  %v327_v25 = vshrl.u32 %v1975_v16, 16  ;;  %v1392_v9 = vld [vmem:[%s1787_s8 + $0x34] sm:$0xf] }
  0x3c   : > { %867 = vrot.lane.b32.xlu1 %v1457_v56, %s1705_s25  ;;  %v1456_v29 = vcombine.low %v582_v62, %v592_v14  ;;  %v310_v37 = vrot.slane %v309_v17, 4  ;;  %v320_v23 = vrot.slane %v319_v18, 4  ;;  %v330_v21 = vshll.u32 %v1975_v16, 16  ;;  %v1389_v17 = vld [vmem:[%s1787_s8 + $0x24] sm:$0xf] }
  0x3d   : > { %v687_v38 = vsel %vm1838_vm4, %v685_v8, %v686_v13  ;;  %v336_v26 = vshll.u32 %v1978_v6, 16  ;;  %v340_v27 = vshrl.u32 %v1978_v6, 16  ;;  %v329_v32 = vrot.slane %v327_v25, 4  ;;  %v2023_v18 = vld [vmem:[%s1787_s8 + $0x28] sm:$0xf] }
  0x3e   : > { %865 = vrot.lane.b32.xlu0 %v1456_v29, %s1705_s25  ;;  %v315_v30 = vsel %vm1892_vm5, %v310_v37, %v314_v4  ;;  %v325_v34 = vsel %vm1892_vm5, %v320_v23, %v324_v1  ;;  %v1460_v40 = vcombine.low %v684_v22, %v687_v38  ;;  %v332_v45 = vrot.slane %v330_v21, 5  ;;  %v1396_v21 = vld [vmem:[%s1787_s8 + $0x38] sm:$0x1] }
  0x3f   : > { %v1434_v44 = vcombine.low %v315_v30, %v325_v34  ;;  %v338_v24 = vrot.slane %v336_v26, 5  ;;  %v342_v47 = vrot.slane %v340_v27, 4  ;;  %v346_v48 = vshll.u32 %v250_v11, 16  ;;  %v1395_v34 = vld [vmem:[%s1787_s8 + $0x2c] sm:$0x1] }
  0x40   : > { %v1425_v39 = vrot.slane %v1421_v28, 9  ;;  %v690_v43 = vrot.slane %v1808_v20, 5  ;;  %v693_v58 = vrot.slane %v1924_v31, 5  ;;  %v333_v49 = vor.u32 %v332_v45, %v329_v32 }
  0x41   : > { %741 = vrot.lane.b32.xlu1 %v1434_v44, %s1703_s22  ;;  %v343_v50 = vor.u32 %v342_v47, %v338_v24  ;;  %v1381_v54 = vrot.slane %v353_v52, 9  ;;  %v392_v55 = vrot.slane %v1978_v6, 5  ;;  %v348_v59 = vrot.slane %v346_v48, 5 }
  0x42   : > { %885 = vrot.lane.b32.xlu0 %v1460_v40, %s1706_s26  ;;  %v691_v35 = vsel %vm1838_vm4, %v1425_v39, %v690_v43  ;;  %v692_v20 = vrot.slane %v690_v43, 4  ;;  %v395_v31 = vrot.slane %v250_v11, 5  ;;  %v334_v60 = vrot.slane %v333_v49, 4  ;;  %v1400_v40 = vld [vmem:[%s1787_s8 + $0x30] sm:$0xe] }
  0x43   : > { %v344_v61 = vrot.slane %v343_v50, 4  ;;  %v393_v62 = vsel %vm1838_vm4, %v1381_v54, %v392_v55  ;;  %v394_v0 = vrot.slane %v392_v55, 4  ;;  %v1380_v4 = vrot.slane %v352_v57, 9 }
  0x44   : > { %v694_v3 = vsel %vm1838_vm4, %v692_v20, %v693_v58  ;;  %v385_v5 = vrot.slane %v1951_v46, 5  ;;  %v388_v7 = vrot.slane %v1960_v53, 5  ;;  %v339_v10 = vsel %vm1892_vm5, %v334_v60, %v338_v24 }
  0x45   : > { %v349_v12 = vsel %vm1892_vm5, %v344_v61, %v348_v59  ;;  %v1461_v15 = vcombine.low %v691_v35, %v694_v3  ;;  %v396_v56 = vsel %vm1838_vm4, %v394_v0, %v395_v31  ;;  %v486_v8 = vshrl.u32 %v1391_v2, 16  ;;  %v1399_v35 = vld [vmem:[%s1787_s8 + $0x24] sm:$0xe] }
  0x46   : > { %v1435_v1 = vcombine.low %v339_v10, %v349_v12  ;;  %v1439_v14 = vcombine.low %v393_v62, %v396_v56  ;;  %v386_v53 = vsel %vm1838_vm4, %v1380_v4, %v385_v5  ;;  %v387_v22 = vrot.slane %v385_v5, 4  ;;  %v2041_v62 = vld [vmem:[%s1787_s8 + $0x3c] sm:$0xf] }
  0x47   : > { %887 = vrot.lane.b32.xlu0 %v1461_v15, %s1706_s26  ;;  %v489_v13 = vshll.u32 %v1391_v2, 16  ;;  %v499_v29 = vshrl.u32 %v1392_v9, 16  ;;  %v1443_v37 = vcombine.low %v1391_v2, %v1392_v9  ;;  %v462_v11 = vshrl.u32 %v1389_v17, 16 }
  0x48   : > { %743 = vrot.lane.b32.xlu1 %v1435_v1, %s1703_s22  ;;  %v389_v23 = vsel %vm1838_vm4, %v387_v22, %v388_v7  ;;  %v465_v25 = vshll.u32 %v1389_v17, 16  ;;  %v475_v38 = vshrl.u32 %v2023_v18, 16  ;;  %v488_v27 = vrot.slane %v486_v8, 4  ;;  %v1412_v8 = vld [vmem:[%s1787_s8 + $0x30] sm:$0xf] }
  0x49   : > { %v1438_v26 = vcombine.low %v386_v53, %v389_v23  ;;  %v491_v28 = vrot.slane %v489_v13, 5  ;;  %v1442_v30 = vcombine.low %v1389_v17, %v2023_v18  ;;  %v464_v32 = vrot.slane %v462_v11, 4  ;;  %v1415_v17 = vld [vmem:[%s1787_s8 + $0x40] sm:$0xf]  ;;  %v1413_v23 = vld [vmem:[%s1787_s8 + $0x34] sm:$0xf] }
  0x4a   : > { %v467_v52 = vrot.slane %v465_v25, 5  ;;  %v495_v44 = vshll.u32 %v1392_v9, 16  ;;  %v501_v45 = vrot.slane %v499_v29, 4  ;;  %v505_v47 = vshll.u32 %v1396_v21, 16 }
  0x4b   : > { %761 = vrot.lane.b32.xlu0 %v1438_v26, %s1702_s13  ;;  %v492_v24 = vor.u32 %v491_v28, %v488_v27  ;;  %v471_v48 = vshll.u32 %v2023_v18, 16  ;;  %v477_v39 = vrot.slane %v475_v38, 4  ;;  %v481_v49 = vshll.u32 %v1395_v34, 16  ;;  %v1419_v26 = vld [vmem:[%s1787_s8 + $0x44] sm:$0x1] }
  0x4c   : > { %763 = vrot.lane.b32.xlu1 %v1439_v14, %s1702_s13  ;;  %v497_v43 = vrot.slane %v495_v44, 5  ;;  %v468_v58 = vor.u32 %v467_v52, %v464_v32  ;;  %v1404_v50 = vrot.slane %v1400_v40, 9  ;;  %v507_v55 = vrot.slane %v505_v47, 5  ;;  %v1418_v40 = vld [vmem:[%s1787_s8 + $0x38] sm:$0x1]  ;;  %s1370_s13 = sshll.u32 %s2223_s14, 5 }
  0x4d   : > { %v493_v54 = vrot.slane %v492_v24, 4  ;;  %v473_v57 = vrot.slane %v471_v48, 5  ;;  %v548_v59 = vrot.slane %v1392_v9, 5  ;;  %v483_v60 = vrot.slane %v481_v49, 5  ;;  %v1423_v24 = vld [vmem:[%s1787_s8 + $0x3c] sm:$0xe] }
  0x4e   : > { %v502_v20 = vor.u32 %v501_v45, %v497_v43  ;;  %v469_v31 = vrot.slane %v468_v58, 4  ;;  %v551_v61 = vrot.slane %v1396_v21, 5  ;;  %v1403_v9 = vrot.slane %v1399_v35, 9 }
  0x4f   : > { %785 = vrot.lane.b32.xlu0 %v1442_v30, %s1699_s9  ;;  %v498_v0 = vsel %vm1892_vm5, %v493_v54, %v497_v43  ;;  %v478_v2 = vor.u32 %v477_v39, %v473_v57  ;;  %v549_v3 = vsel %vm1838_vm4, %v1404_v50, %v548_v59  ;;  %v550_v4 = vrot.slane %v548_v59, 4 }
  0x50   : > { %787 = vrot.lane.b32.xlu1 %v1443_v37, %s1699_s9  ;;  %v503_v5 = vrot.slane %v502_v20, 4  ;;  %v474_v7 = vsel %vm1892_vm5, %v469_v31, %v473_v57  ;;  %v541_v10 = vrot.slane %v2023_v18, 5  ;;  %v544_v56 = vrot.slane %v1395_v34, 5  ;;  %v1422_v20 = vld [vmem:[%s1787_s8 + $0x30] sm:$0xe] }
  0x51   : > { %v479_v12 = vrot.slane %v478_v2, 4  ;;  %v552_v15 = vsel %vm1838_vm4, %v550_v4, %v551_v61  ;;  %v642_v1 = vshrl.u32 %v2041_v62, 16  ;;  %v645_v37 = vshll.u32 %v2041_v62, 16 }
  0x52   : > { %v508_v14 = vsel %vm1892_vm5, %v503_v5, %v507_v55  ;;  %v542_v53 = vsel %vm1838_vm4, %v1403_v9, %v541_v10  ;;  %v543_v22 = vrot.slane %v541_v10, 4  ;;  %v1451_v25 = vcombine.low %v549_v3, %v552_v15 }
  0x53   : > { %v1447_v13 = vcombine.low %v498_v0, %v508_v14  ;;  %v484_v18 = vsel %vm1892_vm5, %v479_v12, %v483_v60  ;;  %v644_v29 = vrot.slane %v642_v1, 4  ;;  %v655_v21 = vshrl.u32 %v1415_v17, 16  ;;  %v1633_v1 = vld [vmem:[%s2199_s1 + $0x20] ss:$0 sps:$4 sm:$0xff]  }
  0x54   : > { %v1446_v11 = vcombine.low %v474_v7, %v484_v18  ;;  %v545_v38 = vsel %vm1838_vm4, %v543_v22, %v544_v56  ;;  %v647_v27 = vrot.slane %v645_v37, 5  ;;  %v1455_v28 = vcombine.low %v2041_v62, %v1415_v17  ;;  %1555 = vmatprep.subr.msk.bf16.mxu0 %vm1014_vm6, %v1633_v1  ;;  %1556 = vmatprep.subr.msk.bf16.mxu1 %vm1014_vm6, %v1633_v1 }
  0x55   : > { %807 = vrot.lane.b32.xlu1 %v1447_v13, %s1704_s24  ;;  %v618_v30 = vshrl.u32 %v1412_v8, 16  ;;  %v621_v34 = vshll.u32 %v1412_v8, 16  ;;  %v1450_v32 = vcombine.low %v542_v53, %v545_v38  ;;  %v631_v52 = vshrl.u32 %v1413_v23, 16 }
  0x56   : > { %805 = vrot.lane.b32.xlu0 %v1446_v11, %s1704_s24  ;;  %v651_v44 = vshll.u32 %v1415_v17, 16  ;;  %v657_v45 = vrot.slane %v655_v21, 4  ;;  %v648_v39 = vor.u32 %v647_v27, %v644_v29  ;;  %v661_v43 = vshll.u32 %v1419_v26, 16  ;;  %v1636_v21 = vld [vmem:[%s2199_s1 + $0x10] sm:$0xff]  }
  0x57   : > { %v620_v47 = vrot.slane %v618_v30, 4  ;;  %v623_v48 = vrot.slane %v621_v34, 5  ;;  %v627_v49 = vshll.u32 %v1413_v23, 16  ;;  %v633_v50 = vrot.slane %v631_v52, 4 }
  0x58   : > { %v653_v58 = vrot.slane %v651_v44, 5  ;;  %v637_v54 = vshll.u32 %v1418_v40, 16  ;;  %v1454_v55 = vcombine.low %v1412_v8, %v1413_v23  ;;  %v649_v57 = vrot.slane %v648_v39, 4 }
  0x59   : > { %827 = vrot.lane.b32.xlu1 %v1451_v25, %s1701_s11  ;;  %v624_v59 = vor.u32 %v623_v48, %v620_v47  ;;  %v1427_v35 = vrot.slane %v1423_v24, 9  ;;  %v663_v60 = vrot.slane %v661_v43, 5  ;;  %v629_v61 = vrot.slane %v627_v49, 5 }
  0x5a   : > { %825 = vrot.lane.b32.xlu0 %v1450_v32, %s1701_s11  ;;  %v658_v31 = vor.u32 %v657_v45, %v653_v58  ;;  %v704_v62 = vrot.slane %v1415_v17, 5  ;;  %v654_v0 = vsel %vm1892_vm5, %v649_v57, %v653_v58  ;;  %v639_v3 = vrot.slane %v637_v54, 5  ;;  %s1369_s11 = sshll.u32 %s1772_s23, 3 }
  0x5b   : > { %v625_v2 = vrot.slane %v624_v59, 4  ;;  %v707_v4 = vrot.slane %v1419_v26, 5  ;;  %v634_v7 = vor.u32 %v633_v50, %v629_v61  ;;  %v1426_v10 = vrot.slane %v1422_v20, 9  ;;  %v1639_v26 = vld [vmem:[%s2199_s1] sm:$0xff]   ;;  %p215_p8 = scmp.lt.s32.totalorder %s1369_s11, 31 }
  0x5c   : > { %v659_v5 = vrot.slane %v658_v31, 4  ;;  %v706_v9 = vrot.slane %v704_v62, 4  ;;  %v705_v12 = vsel %vm1838_vm4, %v1427_v35, %v704_v62  ;;  %v697_v15 = vrot.slane %v1413_v23, 5 }
  0x5d   : > { %851 = vrot.lane.b32.xlu1 %v1455_v28, %s1700_s10  ;;  %v700_v56 = vrot.slane %v1418_v40, 5  ;;  %v1428_v17 = vcombine.low %v1866_v63, %v1843_v42  ;;  %v630_v53 = vsel %vm1892_vm5, %v625_v2, %v629_v61  ;;  %v635_v22 = vrot.slane %v634_v7, 4  ;;  %v1635_v42 = vld [vmem:[%s2199_s1 + $0x18] sm:$0xff]   ;;  %s2227_s11 = smov (!%p215_p8, %s1369_s11), 31 }
  0x5e   : > { %849 = vrot.lane.b32.xlu0 %v1454_v55, %s1700_s10  ;;  %v664_v14 = vsel %vm1892_vm5, %v659_v5, %v663_v60  ;;  %v708_v8 = vsel %vm1838_vm4, %v706_v9, %v707_v4  ;;  %v699_v18 = vrot.slane %v697_v15, 4  ;;  %v698_v29 = vsel %vm1838_vm4, %v1426_v10, %v697_v15  ;;  %s218_s22 = sadd.s32 %s1370_s13, %s2227_s11 }
  0x5f   : > { %v1459_v13 = vcombine.low %v654_v0, %v664_v14  ;;  %v640_v63 = vsel %vm1892_vm5, %v635_v22, %v639_v3  ;;  %v1429_v37 = vcombine.low %v1882_v19, %v1854_v51  ;;  %v1463_v11 = vcombine.low %v705_v12, %v708_v8  ;;  %s1371_s24 = sshll.u32 %s218_s22, 2 }
  0x60   : > { %v1458_v23 = vcombine.low %v630_v53, %v640_v63  ;;  %v701_v25 = vsel %vm1838_vm4, %v699_v18, %v700_v56  ;;  %v1016_v38 = vsel %vm1014_vm6, %v1633_v1, 0  ;;  %v1430_v51 = vcombine.low %v1945_v33, %v1951_v46  ;;  %s220_s27 = scalar_lea.vmem %s2200_s2, %s1371_s24 }
  0x61   : > { %871 = vrot.lane.b32.xlu1 %v1459_v13, %s1705_s25  ;;  %1528 = vmatpush3.bf16.msra.mxu0 %v1016_v38  ;;  %v1462_v36 = vcombine.low %v698_v29, %v701_v25  ;;  %v1431_v19 = vcombine.low %v1975_v16, %v1978_v6 }
  0x62   : > { %869 = vrot.lane.b32.xlu0 %v1458_v23, %s1705_s25  ;;  %1529 = vmatprep.subr.bf16.mxu0 %v1635_v42 }
  0x63   : > { %1550 = vmatpush3.bf16.msra.mxu1 %v1016_v38 }
  0x64   : > { %1546 = vmatprep.subr.bf16.mxu1 %v1635_v42 }
  0x65   : > { %891 = vrot.lane.b32.xlu1 %v1463_v11, %s1706_s26  ;;  %1530 = vmatpush3.bf16.msra.mxu0 %v1635_v42 }
  0x66   : > { %889 = vrot.lane.b32.xlu0 %v1462_v36, %s1706_s26  ;;  %1531 = vmatprep.subr.bf16.mxu0 %v1636_v21 }
  0x67   : > { %1551 = vmatpush3.bf16.msra.mxu1 %v1635_v42 }
  0x68   : > { %1547 = vmatprep.subr.bf16.mxu1 %v1636_v21 }
  0x69   : > { %1532 = vmatpush3.bf16.msra.mxu0 %v1636_v21 }
  0x6a   : > { %1533 = vmatprep.subr.bf16.mxu0 %v1637_v41 }
  0x6b   : > { %1552 = vmatpush3.bf16.msra.mxu1 %v1636_v21 }
  0x6c   : > { %1548 = vmatprep.subr.bf16.mxu1 %v1637_v41 }
  0x6d   : > { %1534 = vmatpush3.bf16.msra.mxu0 %v1637_v41 }
  0x6e   : > { %1535 = vmatprep.subr.bf16.mxu0 %v1639_v26 }
  0x6f   : > { %1553 = vmatpush3.bf16.msra.mxu1 %v1637_v41 }
  0x70   : > { %1549 = vmatprep.subr.bf16.mxu1 %v1639_v26 }
  0x71   : > { %1536 = vmatpush3.bf16.msra.mxu0 %v1639_v26 }
  0x73   : > { %1554 = vmatpush3.bf16.msra.mxu1 %v1639_v26 }
  0x8a   : > { %v784_v27 = vpop.permute.xlu1 %783 }
  0x8c   : > { %v782_v28 = vpop.permute.xlu0 %781 }
  0x8e   : > { %v848_v30 = vpop.permute.xlu1 %847 }
  0x90   : > { %v846_v34 = vpop.permute.xlu0 %845 }
  0x97   : > { %v758_v40 = vpop.permute.xlu1 %757  ;;  %v822_v32 = vpop.permute.xlu0 %821 }
  0x9b   : > { %v760_v52 = vpop.permute.xlu1 %759 }
  0x9f   : > { %v824_v45 = vpop.permute.xlu1 %823 }
  0xa1   : > { %v738_v44 = vpop.permute.xlu0 %737 }
  0xa2   : > { %v896_v24 = vsel %vm893_vm7, %v1428_v17, %v738_v44 }
  0xa3   : > { %v908_v48 = vsel %vm906_vm8, %v896_v24, %v758_v40 }
  0xa4   : > { %v917_v49 = vsel %vm915_vm9, %v908_v48, %v782_v28 }
  0xa6   : > { %v740_v47 = vpop.permute.xlu0 %739 }
  0xa7   : > { %v899_v39 = vsel %vm893_vm7, %v1429_v37, %v740_v47  ;;  %v804_v43 = vpop.permute.xlu1 %803 }
  0xa8   : > { %v910_v58 = vsel %vm906_vm8, %v899_v39, %v760_v52 }
  0xa9   : > { %v919_v55 = vsel %vm915_vm9, %v910_v58, %v784_v27 }
  0xaa   : > { %v802_v50 = vpop.permute.xlu0 %801  ;;  %v928_v35 = vsel %vm924_vm10, %v919_v55, %v804_v43 }
  0xab   : > { %v926_v54 = vsel %vm924_vm10, %v917_v49, %v802_v50  ;;  %v937_v60 = vsel %vm933_vm11, %v928_v35, %v824_v45 }
  0xac   : > { %v935_v57 = vsel %vm933_vm11, %v926_v54, %v822_v32  ;;  %v946_v3 = vsel %vm942_vm12, %v937_v60, %v848_v30 }
  0xad   : > { %v944_v31 = vsel %vm942_vm12, %v935_v57, %v846_v34 }
  0xae   : > { %v868_v59 = vpop.permute.xlu1 %867 }
  0xaf   : > { %v955_v4 = vsel %vm951_vm13, %v946_v3, %v868_v59 }
  0xb0   : > { %v866_v20 = vpop.permute.xlu0 %865 }
  0xb1   : > { %v953_v61 = vsel %vm951_vm13, %v944_v31, %v866_v20 }
  0xb3   : > { %v742_v62 = vpop.permute.xlu1 %741 }
  0xb4   : > { %v886_v0 = vpop.permute.xlu0 %885  ;;  %v902_v18 = vsel %vm893_vm7, %v1430_v51, %v742_v62 }
  0xb5   : > { %v962_v2 = vsel %vm960_vm14, %v953_v61, %v886_v0 }
  0xb6   : > { %1537 = vmatprep.mubr.msk.bf16.mxu0 %vm1005_vm15, %v962_v2 }
  0xb9   : > { %v888_v5 = vpop.permute.xlu0 %887 }
  0xba   : > { %v744_v7 = vpop.permute.xlu1 %743  ;;  %v964_v9 = vsel %vm960_vm14, %v955_v4, %v888_v5 }
  0xbb   : > { %1538 = vmatmul.mubr.msk.bf16.vlgmr.msra.gmra.mxu0 %vm1005_vm15, %v964_v9  ;;  %v905_v13 = vsel %vm893_vm7, %v1431_v19, %v744_v7 }
  0xbd   : > { %v762_v10 = vpop.permute.xlu0 %761 }
  0xbe   : > { %v764_v12 = vpop.permute.xlu1 %763  ;;  %v912_v29 = vsel %vm906_vm8, %v902_v18, %v762_v10 }
  0xbf   : > { %v914_v42 = vsel %vm906_vm8, %v905_v13, %v764_v12 }
  0xc1   : > { %v786_v56 = vpop.permute.xlu0 %785 }
  0xc2   : > { %v788_v15 = vpop.permute.xlu1 %787  ;;  %v921_v23 = vsel %vm915_vm9, %v912_v29, %v786_v56 }
  0xc3   : > { %v923_v37 = vsel %vm915_vm9, %v914_v42, %v788_v15 }
  0xc7   : > { %v808_v17 = vpop.permute.xlu1 %807 }
  0xc8   : > { %v806_v1 = vpop.permute.xlu0 %805  ;;  %v932_v11 = vsel %vm924_vm10, %v923_v37, %v808_v17 }
  0xc9   : > { %v930_v6 = vsel %vm924_vm10, %v921_v23, %v806_v1 }
  0xcb   : > { %v828_v14 = vpop.permute.xlu1 %827 }
  0xcc   : > { %v826_v53 = vpop.permute.xlu0 %825  ;;  %v941_v33 = vsel %vm933_vm11, %v932_v11, %v828_v14 }
  0xcd   : > { %v939_v46 = vsel %vm933_vm11, %v930_v6, %v826_v53 }
  0xcf   : > { %v852_v22 = vpop.permute.xlu1 %851 }
  0xd0   : > { %v850_v8 = vpop.permute.xlu0 %849  ;;  %v950_v25 = vsel %vm942_vm12, %v941_v33, %v852_v22 }
  0xd1   : > { %v948_v36 = vsel %vm942_vm12, %v939_v46, %v850_v8 }
  0xd3   : > { %v872_v63 = vpop.permute.xlu1 %871 }
  0xd4   : > { %v870_v16 = vpop.permute.xlu0 %869  ;;  %v959_v21 = vsel %vm951_vm13, %v950_v25, %v872_v63 }
  0xd5   : > { %v957_v51 = vsel %vm951_vm13, %v948_v36, %v870_v16 }
  0xd7   : > { %v892_v38 = vpop.permute.xlu1 %891 }
  0xd8   : > { %v968_v19 = vsel %vm960_vm14, %v959_v21, %v892_v38  ;;  %v890_v41 = vpop.permute.xlu0 %889 }
  0xd9   : > { %v966_v26 = vsel %vm960_vm14, %v957_v51, %v890_v41 }
  0xda   : > { %1541 = vmatprep.mubr.msk.bf16.mxu1 %vm1005_vm15, %v966_v26 }
  0xdb   : > { %1542 = vmatmul.mubr.msk.bf16.vlgmr.msra.gmra.mxu1 %vm1005_vm15, %v968_v19 }
 0x17b   : > { %v1539_v27 = vpop.f32.mrf.mxu0 }
 0x17d   : > { %v1052_v28 = vpop.f32.mrf.mxu0 }
 0x17f   : > { %v1540_v30 = vpop.f32.mrf.mxu0 }
 0x180   : > { %v1503_v34 = vpack.c.bf16 %v1540_v30, %v1539_v27 }
 0x181   : > { %v1055_v40 = vpop.f32.mrf.mxu0 }
 0x182   : > { %1515 = vst [vmem:[%s220_s27 + $0x8] sm:$0xff] %v1503_v34   ;;  %v1498_v32 = vpack.c.bf16 %v1055_v40, %v1052_v28  ;;  %v1123_v52 = vadd.f32 %v1055_v40, %v1052_v28 }
 0x184   : > { %1499 = vst [vmem:[%s220_s27] sm:$0xff] %v1498_v32   ;;  %v1124_v44 = vadd.f32 %v1539_v27, %v1123_v52 }
 0x186   : > { %v1125_v47 = vadd.f32 %v1540_v30, %v1124_v44 }
 0x19b   : > { %v1543_v45 = vpop.f32.mrf.mxu1 }
 0x19d   : > { %v1068_v24 = vpop.f32.mrf.mxu1 }
 0x19e   : > { %v1126_v39 = vadd.f32 %v1125_v47, %v1068_v24 }
 0x19f   : > { %v1544_v48 = vpop.f32.mrf.mxu1 }
 0x1a0   : > { %v1513_v43 = vpack.c.bf16 %v1544_v48, %v1543_v45 }
 0x1a1   : > { %v1071_v58 = vpop.f32.mrf.mxu1 }
 0x1a2   : > { %1517 = vst [vmem:[%s220_s27 + $0x18] sm:$0xff] %v1513_v43   ;;  %v1508_v49 = vpack.c.bf16 %v1071_v58, %v1068_v24  ;;  %v1127_v50 = vadd.f32 %v1126_v39, %v1071_v58 }
 0x1a4   : > { %1516 = vst [vmem:[%s220_s27 + $0x10] sm:$0xff] %v1508_v49   ;;  %v1128_v54 = vadd.f32 %v1543_v45, %v1127_v50 }
 0x1a6   : > { %v1129_v55 = vadd.f32 %v1544_v48, %v1128_v54 }
 0x1a8   : > { %v1130_v57 = vrot.slane %v1129_v55, 4 }
 0x1aa   : > { %v1131_v59 = vadd.f32 %v1130_v57, %v1129_v55 }
 0x1ac   : > { %v1132_v35 = vrot.slane %v1131_v59, 2 }
 0x1ae   : > { %v1133_v20 = vadd.f32 %v1132_v35, %v1131_v59 }
 0x1b0   : > { %v1134_v31 = vrot.slane %v1133_v20, 1 }
 0x1b2   : > { %v1135_v60 = vadd.f32 %v1134_v31, %v1133_v20 }
 0x1b4   : > { %v1136_v61 = vmul.f32 0.015625, %v1135_v60 }
 0x1b6   : > { %v1137_v62 = vsub.f32 %v1052_v28, %v1136_v61  ;;  %v1138_v0 = vsub.f32 %v1055_v40, %v1136_v61  ;;  %v1139_v2 = vsub.f32 %v1539_v27, %v1136_v61  ;;  %v1140_v3 = vsub.f32 %v1540_v30, %v1136_v61 }
 0x1b7   : > { %v1141_v7 = vsub.f32 %v1068_v24, %v1136_v61  ;;  %v1142_v12 = vsub.f32 %v1071_v58, %v1136_v61  ;;  %v1143_v17 = vsub.f32 %v1543_v45, %v1136_v61  ;;  %v1144_v53 = vsub.f32 %v1544_v48, %v1136_v61 }
 0x1b8   : > { %v1145_v4 = vmul.f32 %v1137_v62, %v1137_v62  ;;  %v1146_v5 = vmul.f32 %v1138_v0, %v1138_v0  ;;  %v1147_v9 = vmul.f32 %v1139_v2, %v1139_v2  ;;  %v1148_v15 = vmul.f32 %v1140_v3, %v1140_v3 }
 0x1b9   : > { %v1149_v1 = vmul.f32 %v1141_v7, %v1141_v7  ;;  %v1150_v22 = vmul.f32 %v1142_v12, %v1142_v12  ;;  %v1151_v13 = vmul.f32 %v1143_v17, %v1143_v17  ;;  %v1152_v42 = vmul.f32 %v1144_v53, %v1144_v53 }
 0x1ba   : > { %v1153_v10 = vadd.f32 %v1146_v5, %v1145_v4 }
 0x1bc   : > { %v1154_v56 = vadd.f32 %v1153_v10, %v1147_v9 }
 0x1be   : > { %v1155_v14 = vadd.f32 %v1154_v56, %v1148_v15 }
 0x1c0   : > { %v1156_v8 = vadd.f32 %v1155_v14, %v1149_v1 }
 0x1c2   : > { %v1157_v18 = vadd.f32 %v1156_v8, %v1150_v22 }
 0x1c4   : > { %v1158_v63 = vadd.f32 %v1157_v18, %v1151_v13 }
 0x1c6   : > { %v1159_v29 = vadd.f32 %v1158_v63, %v1152_v42 }
 0x1c8   : > { %v1160_v37 = vrot.slane %v1159_v29, 4 }
 0x1ca   : > { %v1161_v23 = vadd.f32 %v1160_v37, %v1159_v29 }
 0x1cc   : > { %v1162_v11 = vrot.slane %v1161_v23, 2 }
 0x1ce   : > { %v1163_v16 = vadd.f32 %v1162_v11, %v1161_v23  ;;  %1169 = sbr.rel (%p1481_p9) target bundleno = 469 (0x1d5), region = 32 }
 0x1d0   : > { %v1164_v6 = vrot.slane %v1163_v16, 1 }
 0x1d2   : > { %v1165_v33 = vadd.f32 %v1164_v6, %v1163_v16 }
 0x1d3   : > { %1170 = vst [vmem:[%s1785_s7] sm:$0x1] %v1136_v61 }
 0x1d4   : > { %1171 = vst [vmem:[%s1785_s7 + $0x1] sm:$0x1] %v1165_v33 }
 0x1d5 PF: > { %p1482_p10 = scmp.eq.s32.totalorder %s1673_s12, 0 }
 0x1d6   : > { %s1483_s14 = sshll.u32 (!%p1482_p10), %s1673_s12, 6 }
 0x1d7   : > { %1175 = sbr.rel (%p1482_p10) target bundleno = 550 (0x226), region = 36  ;;  %s1177_s23 = scvt.s32.f32 (!%p1482_p10), %s1483_s14 }
 0x1d9   : > { %s1178_s28 = sadd.f32 (!%p1482_p10), 64.0, %s1177_s23  ;;  %s1192_s29 = smul.f32 (!%p1482_p10), 64.0, %s1177_s23 }
 0x1dc   : > { %v1181_v46 = vstv %s1178_s28  ;;  %v1179_v38 = vld [vmem:[%s1785_s7] sm:$0x1]  ;;  %v1189_v21 = vld [vmem:[%s1785_s7 + $0x1] sm:$0x1] }
 0x1dd   : > { %1641 = vrcp.f32 %v1181_v46  ;;  %v1180_v36 = vsub.f32 %v1136_v61, %v1179_v38  ;;  %v1190_v41 = vadd.f32 %v1189_v21, %v1165_v33 }
 0x1df   : > { %v1191_v51 = vmul.f32 %v1180_v36, %v1180_v36 }
 0x1ea   : > { %v1642_v25 = vpop.eup %1641 }
 0x1eb   : > { %1558 = vpush %v1642_v25 }
 0x21c   : > { %s1559_s30 = spop %1558 }
 0x21d   : > { %s1184_s4 = smul.f32 64.0, %s1559_s30 }
 0x21e   : > { %s1196_s5 = smul.f32 %s1559_s30, %s1192_s29 }
 0x21f   : > { %v1185_v19 = vstv %s1184_s4 }
 0x220   : > { %v1186_v26 = vmul.f32 %v1185_v19, %v1180_v36  ;;  %v1197_v27 = vstv %s1196_s5 }
 0x221   : > { %v1198_v28 = vmul.f32 %v1197_v27, %v1191_v51 }
 0x222   : > { %v1187_v30 = vadd.f32 %v1186_v26, %v1179_v38 }
 0x223   : > { %v1199_v34 = vadd.f32 %v1198_v28, %v1190_v41 }
 0x224   : > { %1188 = vst [vmem:[%s1785_s7] sm:$0x1] %v1187_v30 }
 0x225   : > { %1200 = vst [vmem:[%s1785_s7 + $0x1] sm:$0x1] %v1199_v34 }
 0x226 PF: > { %s14_s18 = sadd.s32 1, %s1697_s18   ;;  %s2206_s12 = smov %s1685_s15 }
 0x227   : > { %p11_p11 = scmp.ge.s32.totalorder %s14_s18, 10   ;;  %s2207_s13 = smov %s1689_s16 }
 0x228   : > { %s2208_s14 = smov %s1693_s17  ;;  %s2209_s15 = smov %s2213_s19 }
 0x229   : > { %s2210_s16 = smov %s2217_s20  ;;  %s2211_s17 = smov %s2221_s21 }
 0x22a   :  { %13 = sbr.rel (!%p11_p11) target bundleno = 4 (0x4), region = 81 }

</bundles_post_ra>
